<compile_context>
chip_gen: v7x
topology: tpu7x:2x2x1
jax: 0.10.0
libtpu: 0.0.40
codegen_flags: <defaults>
</compile_context>

<pallas_src>
import jax
import jax.numpy as jnp
from jax.experimental import pallas as pl
from jax.experimental.pallas import tpu as pltpu


# --------------------------------------------------------------------------- #
# Kernel A: dense VMEM im2col slab copies + fused conv matmul (MXU)            #
#           + per-frame BN partial statistics                                  #
# --------------------------------------------------------------------------- #
def _make_conv_kernel(WP, M, TS):
    def kernel(lhsT_ref, w_ref, y_ref, s1_ref, s2_ref, patch_ref):
        # lhsT_ref : (1, 2, 2, TS, (Ho+3)*WP) bf16  [H-parity, out-col-parity, tap, pix]
        # w_ref    : (7*TS, Cout) bf16   (per-kh groups of TS rows; pad rows are zero)
        # patch_ref: (7*TS, M)    bf16 scratch, M = Ho*WP
        # y_ref    : (1, M, 2*Cout) bf16 ; s1/s2: (1, 1, 2*Cout) f32
        ys, s1s, s2s = [], [], []
        for s in range(2):                       # output-column parity (even / odd)
            for kh in range(7):                  # build the fused patch: 7 dense,
                p, a = kh % 2, kh // 2           # 8-sublane-aligned slab copies
                patch_ref[TS * kh:TS * (kh + 1), :] = (
                    lhsT_ref[0, p, s, :, a * WP:a * WP + M])
            # (K, M)^T @ (K, Cout) -> (M, Cout): pixel-major output, f32 accumulation.
            y = jax.lax.dot_general(
                patch_ref[...], w_ref[...],
                dimension_numbers=(((0,), (0,)), ((), ())),
                preferred_element_type=jnp.float32)
            s1s.append(jnp.sum(y, axis=0, keepdims=True))
            s2s.append(jnp.sum(y * y, axis=0, keepdims=True))
            ys.append(y.astype(y_ref.dtype))
        y_ref[0] = jnp.concatenate(ys, axis=-1)          # lane-dense 2*Cout handoff
        s1_ref[0] = jnp.concatenate(s1s, axis=-1)        # per-step BN partials (f32)
        s2_ref[0] = jnp.concatenate(s2s, axis=-1)
    return kernel


def conv_and_stats(lhsT, w_full, Ho, WP):
    NF = lhsT.shape[0]
    TS, Mq = lhsT.shape[-2], lhsT.shape[-1]
    K, Cout = w_full.shape
    M = Ho * WP
    flops = 2 * NF * 2 * M * K * Cout
    bytes_accessed = (lhsT.size * 2 + K * Cout * 2
                      + NF * M * 2 * Cout * 2 + 2 * NF * 2 * Cout * 4)
    # TODO(synk): on v5e, batch 2+ frames per grid step to amortize per-step overhead.
    return pl.pallas_call(
        _make_conv_kernel(WP, M, TS),
        out_shape=(
            jax.ShapeDtypeStruct((NF, M, 2 * Cout), jnp.bfloat16),
            jax.ShapeDtypeStruct((NF, 1, 2 * Cout), jnp.float32),
            jax.ShapeDtypeStruct((NF, 1, 2 * Cout), jnp.float32),
        ),
        grid=(NF,),
        in_specs=[
            pl.BlockSpec((1, 2, 2, TS, Mq), lambda i: (i, 0, 0, 0, 0)),
            pl.BlockSpec((K, Cout), lambda i: (0, 0)),
        ],
        out_specs=(
            pl.BlockSpec((1, M, 2 * Cout), lambda i: (i, 0, 0)),
            pl.BlockSpec((1, 1, 2 * Cout), lambda i: (i, 0, 0)),
            pl.BlockSpec((1, 1, 2 * Cout), lambda i: (i, 0, 0)),
        ),
        scratch_shapes=[pltpu.VMEM((K, M), jnp.bfloat16)],
        compiler_params=pltpu.CompilerParams(
            dimension_semantics=("parallel",),
            vmem_limit_bytes=48 * 1024 * 1024),
        cost_estimate=pl.CostEstimate(flops=flops, transcendentals=0,
                                      bytes_accessed=bytes_accessed),
    )(lhsT, w_full)


# --------------------------------------------------------------------------- #
# Kernel B: fused BatchNorm (affine, bf16) + ReLU + MaxPool3d(3, (1,2,2), 1)   #
# --------------------------------------------------------------------------- #
def _make_pool_kernel(Ho, WP, HP, C, D):
    def kernel(scale_ref, shift_ref, yp_ref, yc_ref, yn_ref, o_ref):
        d = pl.program_id(1)
        scale = scale_ref[...]                      # (1, 2C) bf16
        shift = shift_ref[...]

        def bn_relu_wh(y):                          # y: (Ho, WP, 2C) bf16
            z = jnp.maximum(y * scale + shift, jnp.zeros_like(y))   # BN + ReLU
            # Zero padding is exact below: post-ReLU values are >= 0 and every pooling
            # window contains at least one valid element.
            ev, od = z[:, :, :C], z[:, :, C:]       # conv columns 2j / 2j+1
            od_l = jnp.concatenate(                 # conv column 2j-1
                [jnp.zeros((Ho, 1, C), z.dtype), od[:, :-1, :]], axis=1)
            r = jnp.maximum(jnp.maximum(ev, od), od_l)           # (Ho, WP, C)
            r2 = r.reshape(HP, 2, WP, C)            # leading-dim split: layout-preserving
            re, ro = r2[:, 0], r2[:, 1]             # conv rows 2i / 2i+1
            ro_u = jnp.concatenate(                 # conv row 2i-1
                [jnp.zeros((1, WP, C), z.dtype), ro[:-1]], axis=0)
            return jnp.maximum(jnp.maximum(re, ro), ro_u)        # (HP, WP, C)

        cur = bn_relu_wh(yc_ref[0, 0])
        prv = bn_relu_wh(yp_ref[0, 0]) * (d > 0).astype(cur.dtype)
        nxt = bn_relu_wh(yn_ref[0, 0]) * (d < D - 1).astype(cur.dtype)
        o_ref[0, 0] = jnp.maximum(jnp.maximum(cur, prv), nxt).astype(o_ref.dtype)
    return kernel


def bn_relu_maxpool(y5, scale2, shift2):
    # y5: (N, D, Ho, WP, 2C) bf16 ; scale2/shift2: (1, 2C) bf16
    N, D, Ho, WP, C2 = y5.shape
    C, HP = C2 // 2, Ho // 2

    def frame_spec(fn):
        return pl.BlockSpec((1, 1, Ho, WP, C2),
                            lambda n, d: (n, fn(d), 0, 0, 0))

    # TODO(synk): for very large Ho also tile over H with a 1-row halo.
    return pl.pallas_call(
        _make_pool_kernel(Ho, WP, HP, C, D),
        out_shape=jax.ShapeDtypeStruct((N, D, HP, WP, C), jnp.float32),
        grid=(N, D),
        in_specs=[
            pl.BlockSpec((1, C2), lambda n, d: (0, 0)),
            pl.BlockSpec((1, C2), lambda n, d: (0, 0)),
            frame_spec(lambda d: jnp.maximum(d - 1, 0)),     # clamped D halo
            frame_spec(lambda d: d),
            frame_spec(lambda d: jnp.minimum(d + 1, D - 1)),
        ],
        out_specs=pl.BlockSpec((1, 1, HP, WP, C), lambda n, d: (n, d, 0, 0, 0)),
        compiler_params=pltpu.CompilerParams(
            dimension_semantics=("parallel", "parallel"),
            vmem_limit_bytes=48 * 1024 * 1024),
    )(scale2, shift2, y5, y5, y5)


# --------------------------------------------------------------------------- #
# Wrapper-side layout prep (lane-dense, ~3.5x duplication only)                #
# --------------------------------------------------------------------------- #
def _build_conv_lhs(x_ncdhw, Ho, WP):
    # (N, Cin, D, H, W) -> (NF, 2, 2, TS, (Ho+3)*WP) bf16 kw-direction im2col.
    N, Cin, D, H, W = x_ncdhw.shape
    NF = N * D
    x = jnp.transpose(x_ncdhw, (0, 2, 3, 4, 1)).reshape(NF, H, W, Cin)
    xp = jnp.pad(x, ((0, 0), (3, 3), (3, 3), (0, 0))).astype(jnp.bfloat16)
    parts = []
    for p in range(2):                              # input-row parity (kh parity)
        rows = xp[:, p::2]                          # (NF, Ho+3, W+6, Cin)
        for s in range(2):                          # output-column parity
            taps = []
            for kw in range(7):
                c0 = 2 * s + kw
                taps.append(rows[:, :, c0:c0 + 4 * (WP - 1) + 1:4, :])
            t = jnp.stack(taps, axis=3)             # (NF, Ho+3, WP, 7, Cin)
            t = jnp.transpose(t, (0, 3, 4, 1, 2))   # (NF, 7, Cin, Ho+3, WP)
            parts.append(t.reshape(NF, 7 * Cin, (Ho + 3) * WP))
    lhsT = jnp.stack(parts, axis=1).reshape(NF, 2, 2, 7 * Cin, (Ho + 3) * WP)
    tap_pad = (-7 * Cin) % 8                        # 21 -> 24: aligned slab copies
    return jnp.pad(lhsT, ((0, 0), (0, 0), (0, 0), (0, tap_pad), (0, 0)))


def _build_conv_weights(w_pt, Cin):
    Cout = w_pt.shape[0]
    wk = jnp.transpose(w_pt[:, :, 0], (2, 3, 1, 0)).reshape(7, 7 * Cin, Cout)
    tap_pad = (-7 * Cin) % 8
    wk = jnp.pad(wk, ((0, 0), (0, tap_pad), (0, 0)))
    return wk.reshape(7 * (7 * Cin + tap_pad), Cout).astype(jnp.bfloat16)


# --------------------------------------------------------------------------- #
# Full forward pass                                                            #
# --------------------------------------------------------------------------- #
@jax.jit
def res1_forward(x_ncdhw, w_pt, gamma, beta, eps=1e-5):
    # Matches nn.Module forward of a freshly-constructed Res1 in train mode:
    # BatchNorm normalizes with the biased batch statistics.
    N, Cin, D, H, W = x_ncdhw.shape
    Cout = w_pt.shape[0]
    # TODO(synk): odd H/W need extra edge handling in the parity decomposition.
    assert H % 4 == 0 and W % 4 == 0, (H, W)
    Ho, Wo, HP, WP = H // 2, W // 2, H // 4, W // 4
    NF = N * D

    lhsT = _build_conv_lhs(x_ncdhw, Ho, WP)
    w_full = _build_conv_weights(w_pt, Cin)

    y_flat, s1, s2 = conv_and_stats(lhsT, w_full, Ho, WP)

    # Training-mode BatchNorm statistics (f32, biased variance).  E[y^2]-E[y]^2 in f32
    # is adequate at stem-conv scales; per-frame partial sums limit accumulation length.
    cnt = NF * Ho * Wo
    s1c = jnp.sum(s1.reshape(NF, 2, Cout), axis=(0, 1))
    s2c = jnp.sum(s2.reshape(NF, 2, Cout), axis=(0, 1))
    mean = s1c / cnt
    var = s2c / cnt - mean * mean
    scale = gamma / jnp.sqrt(var + eps)
    shift = beta - mean * scale
    scale2 = jnp.tile(scale, 2).reshape(1, 2 * Cout).astype(jnp.bfloat16)
    shift2 = jnp.tile(shift, 2).reshape(1, 2 * Cout).astype(jnp.bfloat16)

    # Contiguous leading-dim split: exactly the layout Kernel B consumes.
    y5 = y_flat.reshape(N, D, Ho, WP, 2 * Cout)
    pooled = bn_relu_maxpool(y5, scale2, shift2)          # (N, D, HP, WP, C) f32
    # TODO(synk): fold this last relayout into Kernel B's out_specs via an in-kernel
    # (HP, WP, C) -> (C, HP, WP) transpose once that lowering is validated on-device.
    return jnp.transpose(pooled, (0, 4, 1, 2, 3))         # NCDHW


# --------------------------------------------------------------------------- #
# Pure-JAX reference for verification                                          #
# --------------------------------------------------------------------------- #
def res1_reference(x_ncdhw, w_pt, gamma, beta, eps=1e-5):
    x = jnp.transpose(x_ncdhw, (0, 2, 3, 4, 1))                       # NDHWC
    w = jnp.transpose(w_pt, (2, 3, 4, 1, 0))                          # DHWIO
    y = jax.lax.conv_general_dilated(
        x, w, window_strides=(1, 2, 2),
        padding=((0, 0), (3, 3), (3, 3)),
        dimension_numbers=("NDHWC", "DHWIO", "NDHWC"),
        precision=jax.lax.Precision.HIGHEST)
    mean = jnp.mean(y, axis=(0, 1, 2, 3))
    var = jnp.mean(jnp.square(y - mean), axis=(0, 1, 2, 3))
    y = (y - mean) * (gamma / jnp.sqrt(var + eps)) + beta
    y = jnp.maximum(y, 0.0)
    y = jax.lax.reduce_window(
        y, -jnp.inf, jax.lax.max,
        window_dimensions=(1, 3, 3, 3, 1),
        window_strides=(1, 1, 2, 2, 1),
        padding=((0, 0), (1, 1), (1, 1), (1, 1), (0, 0)))
    return jnp.transpose(y, (0, 4, 1, 2, 3))


if __name__ == "__main__":
    N, Cin, D, H, W = 2, 3, 4, 16, 16
    Cout = 64

    key = jax.random.PRNGKey(0)
    kx, kw, kg, kb = jax.random.split(key, 4)
    x = jax.random.normal(kx, (N, Cin, D, H, W), jnp.float32)
    w_conv = 0.05 * jax.random.normal(kw, (Cout, Cin, 1, 7, 7), jnp.float32)
    gamma = 1.0 + 0.1 * jax.random.normal(kg, (Cout,), jnp.float32)
    beta = 0.1 * jax.random.normal(kb, (Cout,), jnp.float32)

    out = jax.block_until_ready(res1_forward(x, w_conv, gamma, beta))
    ref = jax.block_until_ready(res1_reference(x, w_conv, gamma, beta))

    assert out.shape == (N, Cout, D, H // 4, W // 4), out.shape
    err = float(jnp.max(jnp.abs(out - ref)))
    # bf16 conv inputs/weights + bf16 activation handoff + bf16 BN/pool math vs. an
    # all-f32 reference on BN-normalized activations => expected max-abs error ~2e-2..8e-2.
    assert err < 1e-1, f"max abs error {err}"
    print("KERNEL_OK")
</pallas_src>

<mosaic_0001>
module attributes {stable_mosaic.version = 11 : i64} {
  func.func @kernel(%arg0: i32, %arg1: memref<1x2x2x24x44xbf16, #tpu.memory_space<vmem>>, %arg2: memref<168x64xbf16, #tpu.memory_space<vmem>>, %arg3: memref<1x32x128xbf16, #tpu.memory_space<vmem>>, %arg4: memref<1x1x128xf32, #tpu.memory_space<vmem>>, %arg5: memref<1x1x128xf32, #tpu.memory_space<vmem>>, %arg6: memref<168x32xbf16, #tpu.memory_space<vmem>>) attributes {dimension_semantics = [#tpu.dimension_semantics<parallel>], iteration_bounds = array<i64: 8>, scalar_prefetch = 0 : i64, scratch_operands = 1 : i64, tpu.core_type = #tpu.core_type<tc>, window_params = [{transform_indices = @transform_0, window_bounds = array<i64: 1, 2, 2, 24, 44>}, {pipeline_mode = #tpu.pipeline_mode<synchronous>, transform_indices = @transform_1, window_bounds = array<i64: 168, 64>}, {transform_indices = @transform_2, window_bounds = array<i64: 1, 32, 128>}, {transform_indices = @transform_3, window_bounds = array<i64: 1, 1, 128>}, {transform_indices = @transform_4, window_bounds = array<i64: 1, 1, 128>}]} {
    %c0 = arith.constant 0 : index
    %c0_0 = arith.constant 0 : index
    %c0_1 = arith.constant 0 : index
    %c0_2 = arith.constant 0 : index
    %c0_3 = arith.constant 0 : index
    %0 = vector.load %arg1[%c0, %c0_0, %c0_1, %c0_2, %c0_3] : memref<1x2x2x24x44xbf16, #tpu.memory_space<vmem>>, vector<1x1x1x24x32xbf16>
    %1 = vector.shape_cast %0 : vector<1x1x1x24x32xbf16> to vector<24x32xbf16>
    %c0_4 = arith.constant 0 : index
    %c0_5 = arith.constant 0 : index
    %2 = vector.load %arg6[%c0_4, %c0_5] : memref<168x32xbf16, #tpu.memory_space<vmem>>, vector<24x32xbf16>
    tpu.vector_store %arg6[%c0_4, %c0_5], %1 {strides = array<i32>} : memref<168x32xbf16, #tpu.memory_space<vmem>>, vector<24x32xbf16>,
    %c0_6 = arith.constant 0 : index
    %c1 = arith.constant 1 : index
    %c0_7 = arith.constant 0 : index
    %c0_8 = arith.constant 0 : index
    %c0_9 = arith.constant 0 : index
    %3 = vector.load %arg1[%c0_6, %c1, %c0_7, %c0_8, %c0_9] : memref<1x2x2x24x44xbf16, #tpu.memory_space<vmem>>, vector<1x1x1x24x32xbf16>
    %4 = vector.shape_cast %3 : vector<1x1x1x24x32xbf16> to vector<24x32xbf16>
    %c24 = arith.constant 24 : index
    %c0_10 = arith.constant 0 : index
    %5 = vector.load %arg6[%c24, %c0_10] : memref<168x32xbf16, #tpu.memory_space<vmem>>, vector<24x32xbf16>
    tpu.vector_store %arg6[%c24, %c0_10], %4 {strides = array<i32>} : memref<168x32xbf16, #tpu.memory_space<vmem>>, vector<24x32xbf16>,
    %c0_11 = arith.constant 0 : index
    %c0_12 = arith.constant 0 : index
    %c0_13 = arith.constant 0 : index
    %c0_14 = arith.constant 0 : index
    %c4 = arith.constant 4 : index
    %6 = vector.load %arg1[%c0_11, %c0_12, %c0_13, %c0_14, %c4] : memref<1x2x2x24x44xbf16, #tpu.memory_space<vmem>>, vector<1x1x1x24x32xbf16>
    %7 = vector.shape_cast %6 : vector<1x1x1x24x32xbf16> to vector<24x32xbf16>
    %c48 = arith.constant 48 : index
    %c0_15 = arith.constant 0 : index
    %8 = vector.load %arg6[%c48, %c0_15] : memref<168x32xbf16, #tpu.memory_space<vmem>>, vector<24x32xbf16>
    tpu.vector_store %arg6[%c48, %c0_15], %7 {strides = array<i32>} : memref<168x32xbf16, #tpu.memory_space<vmem>>, vector<24x32xbf16>,
    %c0_16 = arith.constant 0 : index
    %c1_17 = arith.constant 1 : index
    %c0_18 = arith.constant 0 : index
    %c0_19 = arith.constant 0 : index
    %c4_20 = arith.constant 4 : index
    %9 = vector.load %arg1[%c0_16, %c1_17, %c0_18, %c0_19, %c4_20] : memref<1x2x2x24x44xbf16, #tpu.memory_space<vmem>>, vector<1x1x1x24x32xbf16>
    %10 = vector.shape_cast %9 : vector<1x1x1x24x32xbf16> to vector<24x32xbf16>
    %c72 = arith.constant 72 : index
    %c0_21 = arith.constant 0 : index
    %11 = vector.load %arg6[%c72, %c0_21] : memref<168x32xbf16, #tpu.memory_space<vmem>>, vector<24x32xbf16>
    tpu.vector_store %arg6[%c72, %c0_21], %10 {strides = array<i32>} : memref<168x32xbf16, #tpu.memory_space<vmem>>, vector<24x32xbf16>,
    %c0_22 = arith.constant 0 : index
    %c0_23 = arith.constant 0 : index
    %c0_24 = arith.constant 0 : index
    %c0_25 = arith.constant 0 : index
    %c8 = arith.constant 8 : index
    %12 = vector.load %arg1[%c0_22, %c0_23, %c0_24, %c0_25, %c8] : memref<1x2x2x24x44xbf16, #tpu.memory_space<vmem>>, vector<1x1x1x24x32xbf16>
    %13 = vector.shape_cast %12 : vector<1x1x1x24x32xbf16> to vector<24x32xbf16>
    %c96 = arith.constant 96 : index
    %c0_26 = arith.constant 0 : index
    %14 = vector.load %arg6[%c96, %c0_26] : memref<168x32xbf16, #tpu.memory_space<vmem>>, vector<24x32xbf16>
    tpu.vector_store %arg6[%c96, %c0_26], %13 {strides = array<i32>} : memref<168x32xbf16, #tpu.memory_space<vmem>>, vector<24x32xbf16>,
    %c0_27 = arith.constant 0 : index
    %c1_28 = arith.constant 1 : index
    %c0_29 = arith.constant 0 : index
    %c0_30 = arith.constant 0 : index
    %c8_31 = arith.constant 8 : index
    %15 = vector.load %arg1[%c0_27, %c1_28, %c0_29, %c0_30, %c8_31] : memref<1x2x2x24x44xbf16, #tpu.memory_space<vmem>>, vector<1x1x1x24x32xbf16>
    %16 = vector.shape_cast %15 : vector<1x1x1x24x32xbf16> to vector<24x32xbf16>
    %c120 = arith.constant 120 : index
    %c0_32 = arith.constant 0 : index
    %17 = vector.load %arg6[%c120, %c0_32] : memref<168x32xbf16, #tpu.memory_space<vmem>>, vector<24x32xbf16>
    tpu.vector_store %arg6[%c120, %c0_32], %16 {strides = array<i32>} : memref<168x32xbf16, #tpu.memory_space<vmem>>, vector<24x32xbf16>,
    %c0_33 = arith.constant 0 : index
    %c0_34 = arith.constant 0 : index
    %c0_35 = arith.constant 0 : index
    %c0_36 = arith.constant 0 : index
    %c12 = arith.constant 12 : index
    %18 = vector.load %arg1[%c0_33, %c0_34, %c0_35, %c0_36, %c12] : memref<1x2x2x24x44xbf16, #tpu.memory_space<vmem>>, vector<1x1x1x24x32xbf16>
    %19 = vector.shape_cast %18 : vector<1x1x1x24x32xbf16> to vector<24x32xbf16>
    %c144 = arith.constant 144 : index
    %c0_37 = arith.constant 0 : index
    %20 = vector.load %arg6[%c144, %c0_37] : memref<168x32xbf16, #tpu.memory_space<vmem>>, vector<24x32xbf16>
    tpu.vector_store %arg6[%c144, %c0_37], %19 {strides = array<i32>} : memref<168x32xbf16, #tpu.memory_space<vmem>>, vector<24x32xbf16>,
    %c0_38 = arith.constant 0 : index
    %c0_39 = arith.constant 0 : index
    %21 = vector.load %arg6[%c0_38, %c0_39] : memref<168x32xbf16, #tpu.memory_space<vmem>>, vector<168x32xbf16>
    %c0_40 = arith.constant 0 : index
    %c0_41 = arith.constant 0 : index
    %22 = vector.load %arg2[%c0_40, %c0_41] : memref<168x64xbf16, #tpu.memory_space<vmem>>, vector<168x64xbf16>
    %cst = arith.constant dense<0.000000e+00> : vector<32x64xf32>
    %23 = tpu.matmul %21, %22, %cst {dimension_numbers = #tpu.dot_dimension_numbers<[0], [0], [1], [1], [0, 1, 1, 1], [], []>} : vector<168x32xbf16>, vector<168x64xbf16>, vector<32x64xf32> -> vector<32x64xf32>
    %cst_42 = arith.constant dense<0.000000e+00> : vector<64xf32>
    %24 = vector.multi_reduction <add>, %23, %cst_42 [0] : vector<32x64xf32> to vector<64xf32>
    %25 = vector.shape_cast %24 : vector<64xf32> to vector<1x64xf32>
    %26 = arith.mulf %23, %23 : vector<32x64xf32>
    %cst_43 = arith.constant dense<0.000000e+00> : vector<64xf32>
    %27 = vector.multi_reduction <add>, %26, %cst_43 [0] : vector<32x64xf32> to vector<64xf32>
    %28 = vector.shape_cast %27 : vector<64xf32> to vector<1x64xf32>
    %29 = arith.truncf %23 : vector<32x64xf32> to vector<32x64xbf16>
    %c0_44 = arith.constant 0 : index
    %c0_45 = arith.constant 0 : index
    %c1_46 = arith.constant 1 : index
    %c0_47 = arith.constant 0 : index
    %c0_48 = arith.constant 0 : index
    %30 = vector.load %arg1[%c0_44, %c0_45, %c1_46, %c0_47, %c0_48] : memref<1x2x2x24x44xbf16, #tpu.memory_space<vmem>>, vector<1x1x1x24x32xbf16>
    %31 = vector.shape_cast %30 : vector<1x1x1x24x32xbf16> to vector<24x32xbf16>
    %c0_49 = arith.constant 0 : index
    %c0_50 = arith.constant 0 : index
    %32 = vector.load %arg6[%c0_49, %c0_50] : memref<168x32xbf16, #tpu.memory_space<vmem>>, vector<24x32xbf16>
    tpu.vector_store %arg6[%c0_49, %c0_50], %31 {strides = array<i32>} : memref<168x32xbf16, #tpu.memory_space<vmem>>, vector<24x32xbf16>,
    %c0_51 = arith.constant 0 : index
    %c1_52 = arith.constant 1 : index
    %c1_53 = arith.constant 1 : index
    %c0_54 = arith.constant 0 : index
    %c0_55 = arith.constant 0 : index
    %33 = vector.load %arg1[%c0_51, %c1_52, %c1_53, %c0_54, %c0_55] : memref<1x2x2x24x44xbf16, #tpu.memory_space<vmem>>, vector<1x1x1x24x32xbf16>
    %34 = vector.shape_cast %33 : vector<1x1x1x24x32xbf16> to vector<24x32xbf16>
    %c24_56 = arith.constant 24 : index
    %c0_57 = arith.constant 0 : index
    %35 = vector.load %arg6[%c24_56, %c0_57] : memref<168x32xbf16, #tpu.memory_space<vmem>>, vector<24x32xbf16>
    tpu.vector_store %arg6[%c24_56, %c0_57], %34 {strides = array<i32>} : memref<168x32xbf16, #tpu.memory_space<vmem>>, vector<24x32xbf16>,
    %c0_58 = arith.constant 0 : index
    %c0_59 = arith.constant 0 : index
    %c1_60 = arith.constant 1 : index
    %c0_61 = arith.constant 0 : index
    %c4_62 = arith.constant 4 : index
    %36 = vector.load %arg1[%c0_58, %c0_59, %c1_60, %c0_61, %c4_62] : memref<1x2x2x24x44xbf16, #tpu.memory_space<vmem>>, vector<1x1x1x24x32xbf16>
    %37 = vector.shape_cast %36 : vector<1x1x1x24x32xbf16> to vector<24x32xbf16>
    %c48_63 = arith.constant 48 : index
    %c0_64 = arith.constant 0 : index
    %38 = vector.load %arg6[%c48_63, %c0_64] : memref<168x32xbf16, #tpu.memory_space<vmem>>, vector<24x32xbf16>
    tpu.vector_store %arg6[%c48_63, %c0_64], %37 {strides = array<i32>} : memref<168x32xbf16, #tpu.memory_space<vmem>>, vector<24x32xbf16>,
    %c0_65 = arith.constant 0 : index
    %c1_66 = arith.constant 1 : index
    %c1_67 = arith.constant 1 : index
    %c0_68 = arith.constant 0 : index
    %c4_69 = arith.constant 4 : index
    %39 = vector.load %arg1[%c0_65, %c1_66, %c1_67, %c0_68, %c4_69] : memref<1x2x2x24x44xbf16, #tpu.memory_space<vmem>>, vector<1x1x1x24x32xbf16>
    %40 = vector.shape_cast %39 : vector<1x1x1x24x32xbf16> to vector<24x32xbf16>
    %c72_70 = arith.constant 72 : index
    %c0_71 = arith.constant 0 : index
    %41 = vector.load %arg6[%c72_70, %c0_71] : memref<168x32xbf16, #tpu.memory_space<vmem>>, vector<24x32xbf16>
    tpu.vector_store %arg6[%c72_70, %c0_71], %40 {strides = array<i32>} : memref<168x32xbf16, #tpu.memory_space<vmem>>, vector<24x32xbf16>,
    %c0_72 = arith.constant 0 : index
    %c0_73 = arith.constant 0 : index
    %c1_74 = arith.constant 1 : index
    %c0_75 = arith.constant 0 : index
    %c8_76 = arith.constant 8 : index
    %42 = vector.load %arg1[%c0_72, %c0_73, %c1_74, %c0_75, %c8_76] : memref<1x2x2x24x44xbf16, #tpu.memory_space<vmem>>, vector<1x1x1x24x32xbf16>
    %43 = vector.shape_cast %42 : vector<1x1x1x24x32xbf16> to vector<24x32xbf16>
    %c96_77 = arith.constant 96 : index
    %c0_78 = arith.constant 0 : index
    %44 = vector.load %arg6[%c96_77, %c0_78] : memref<168x32xbf16, #tpu.memory_space<vmem>>, vector<24x32xbf16>
    tpu.vector_store %arg6[%c96_77, %c0_78], %43 {strides = array<i32>} : memref<168x32xbf16, #tpu.memory_space<vmem>>, vector<24x32xbf16>,
    %c0_79 = arith.constant 0 : index
    %c1_80 = arith.constant 1 : index
    %c1_81 = arith.constant 1 : index
    %c0_82 = arith.constant 0 : index
    %c8_83 = arith.constant 8 : index
    %45 = vector.load %arg1[%c0_79, %c1_80, %c1_81, %c0_82, %c8_83] : memref<1x2x2x24x44xbf16, #tpu.memory_space<vmem>>, vector<1x1x1x24x32xbf16>
    %46 = vector.shape_cast %45 : vector<1x1x1x24x32xbf16> to vector<24x32xbf16>
    %c120_84 = arith.constant 120 : index
    %c0_85 = arith.constant 0 : index
    %47 = vector.load %arg6[%c120_84, %c0_85] : memref<168x32xbf16, #tpu.memory_space<vmem>>, vector<24x32xbf16>
    tpu.vector_store %arg6[%c120_84, %c0_85], %46 {strides = array<i32>} : memref<168x32xbf16, #tpu.memory_space<vmem>>, vector<24x32xbf16>,
    %c0_86 = arith.constant 0 : index
    %c0_87 = arith.constant 0 : index
    %c1_88 = arith.constant 1 : index
    %c0_89 = arith.constant 0 : index
    %c12_90 = arith.constant 12 : index
    %48 = vector.load %arg1[%c0_86, %c0_87, %c1_88, %c0_89, %c12_90] : memref<1x2x2x24x44xbf16, #tpu.memory_space<vmem>>, vector<1x1x1x24x32xbf16>
    %49 = vector.shape_cast %48 : vector<1x1x1x24x32xbf16> to vector<24x32xbf16>
    %c144_91 = arith.constant 144 : index
    %c0_92 = arith.constant 0 : index
    %50 = vector.load %arg6[%c144_91, %c0_92] : memref<168x32xbf16, #tpu.memory_space<vmem>>, vector<24x32xbf16>
    tpu.vector_store %arg6[%c144_91, %c0_92], %49 {strides = array<i32>} : memref<168x32xbf16, #tpu.memory_space<vmem>>, vector<24x32xbf16>,
    %c0_93 = arith.constant 0 : index
    %c0_94 = arith.constant 0 : index
    %51 = vector.load %arg6[%c0_93, %c0_94] : memref<168x32xbf16, #tpu.memory_space<vmem>>, vector<168x32xbf16>
    %c0_95 = arith.constant 0 : index
    %c0_96 = arith.constant 0 : index
    %52 = vector.load %arg2[%c0_95, %c0_96] : memref<168x64xbf16, #tpu.memory_space<vmem>>, vector<168x64xbf16>
    %cst_97 = arith.constant dense<0.000000e+00> : vector<32x64xf32>
    %53 = tpu.matmul %51, %52, %cst_97 {dimension_numbers = #tpu.dot_dimension_numbers<[0], [0], [1], [1], [0, 1, 1, 1], [], []>} : vector<168x32xbf16>, vector<168x64xbf16>, vector<32x64xf32> -> vector<32x64xf32>
    %cst_98 = arith.constant dense<0.000000e+00> : vector<64xf32>
    %54 = vector.multi_reduction <add>, %53, %cst_98 [0] : vector<32x64xf32> to vector<64xf32>
    %55 = vector.shape_cast %54 : vector<64xf32> to vector<1x64xf32>
    %56 = arith.mulf %53, %53 : vector<32x64xf32>
    %cst_99 = arith.constant dense<0.000000e+00> : vector<64xf32>
    %57 = vector.multi_reduction <add>, %56, %cst_99 [0] : vector<32x64xf32> to vector<64xf32>
    %58 = vector.shape_cast %57 : vector<64xf32> to vector<1x64xf32>
    %59 = arith.truncf %53 : vector<32x64xf32> to vector<32x64xbf16>
    %60 = tpu.concatenate %29, %59 in 1 : vector<32x64xbf16>, vector<32x64xbf16> -> vector<32x128xbf16>
    %c0_100 = arith.constant 0 : index
    %c0_101 = arith.constant 0 : index
    %c0_102 = arith.constant 0 : index
    %61 = vector.load %arg3[%c0_100, %c0_101, %c0_102] : memref<1x32x128xbf16, #tpu.memory_space<vmem>>, vector<1x32x128xbf16>
    %62 = vector.shape_cast %61 : vector<1x32x128xbf16> to vector<32x128xbf16>
    %63 = vector.shape_cast %60 : vector<32x128xbf16> to vector<1x32x128xbf16>
    tpu.vector_store %arg3[%c0_100, %c0_101, %c0_102], %63 {strides = array<i32>} : memref<1x32x128xbf16, #tpu.memory_space<vmem>>, vector<1x32x128xbf16>,
    %64 = tpu.concatenate %25, %55 in 1 : vector<1x64xf32>, vector<1x64xf32> -> vector<1x128xf32>
    %c0_103 = arith.constant 0 : index
    %c0_104 = arith.constant 0 : index
    %c0_105 = arith.constant 0 : index
    %65 = vector.load %arg4[%c0_103, %c0_104, %c0_105] : memref<1x1x128xf32, #tpu.memory_space<vmem>>, vector<1x1x128xf32>
    %66 = vector.shape_cast %65 : vector<1x1x128xf32> to vector<1x128xf32>
    %67 = vector.shape_cast %64 : vector<1x128xf32> to vector<1x1x128xf32>
    tpu.vector_store %arg4[%c0_103, %c0_104, %c0_105], %67 {strides = array<i32>} : memref<1x1x128xf32, #tpu.memory_space<vmem>>, vector<1x1x128xf32>,
    %68 = tpu.concatenate %28, %58 in 1 : vector<1x64xf32>, vector<1x64xf32> -> vector<1x128xf32>
    %c0_106 = arith.constant 0 : index
    %c0_107 = arith.constant 0 : index
    %c0_108 = arith.constant 0 : index
    %69 = vector.load %arg5[%c0_106, %c0_107, %c0_108] : memref<1x1x128xf32, #tpu.memory_space<vmem>>, vector<1x1x128xf32>
    %70 = vector.shape_cast %69 : vector<1x1x128xf32> to vector<1x128xf32>
    %71 = vector.shape_cast %68 : vector<1x128xf32> to vector<1x1x128xf32>
    tpu.vector_store %arg5[%c0_106, %c0_107, %c0_108], %71 {strides = array<i32>} : memref<1x1x128xf32, #tpu.memory_space<vmem>>, vector<1x1x128xf32>,
    return
  }
  func.func @transform_0(%arg0: i32) -> (i32, i32, i32, i32, i32) {
    %c0_i32 = arith.constant 0 : i32
    %c0_i32_0 = arith.constant 0 : i32
    %c0_i32_1 = arith.constant 0 : i32
    %c0_i32_2 = arith.constant 0 : i32
    %c0_i32_3 = arith.constant 0 : i32
    return %arg0, %c0_i32, %c0_i32_0, %c0_i32_1, %c0_i32_2 : i32, i32, i32, i32, i32
  }
  func.func @transform_1(%arg0: i32) -> (i32, i32) {
    %c0_i32 = arith.constant 0 : i32
    %c0_i32_0 = arith.constant 0 : i32
    %c0_i32_1 = arith.constant 0 : i32
    return %c0_i32, %c0_i32_0 : i32, i32
  }
  func.func @transform_2(%arg0: i32) -> (i32, i32, i32) {
    %c0_i32 = arith.constant 0 : i32
    %c0_i32_0 = arith.constant 0 : i32
    %c0_i32_1 = arith.constant 0 : i32
    return %arg0, %c0_i32, %c0_i32_0 : i32, i32, i32
  }
  func.func @transform_3(%arg0: i32) -> (i32, i32, i32) {
    %c0_i32 = arith.constant 0 : i32
    %c0_i32_0 = arith.constant 0 : i32
    %c0_i32_1 = arith.constant 0 : i32
    return %arg0, %c0_i32, %c0_i32_0 : i32, i32, i32
  }
  func.func @transform_4(%arg0: i32) -> (i32, i32, i32) {
    %c0_i32 = arith.constant 0 : i32
    %c0_i32_0 = arith.constant 0 : i32
    %c0_i32_1 = arith.constant 0 : i32
    return %arg0, %c0_i32, %c0_i32_0 : i32, i32, i32
  }
}

module attributes {stable_mosaic.version = 11 : i64} {
  func.func @kernel(%arg0: i32, %arg1: i32, %arg2: memref<1x128xbf16, #tpu.memory_space<vmem>>, %arg3: memref<1x128xbf16, #tpu.memory_space<vmem>>, %arg4: memref<1x1x8x4x128xbf16, #tpu.memory_space<vmem>>, %arg5: memref<1x1x8x4x128xbf16, #tpu.memory_space<vmem>>, %arg6: memref<1x1x8x4x128xbf16, #tpu.memory_space<vmem>>, %arg7: memref<1x1x4x4x64xf32, #tpu.memory_space<vmem>>) attributes {dimension_semantics = [#tpu.dimension_semantics<parallel>, #tpu.dimension_semantics<parallel>], iteration_bounds = array<i64: 2, 4>, scalar_prefetch = 0 : i64, scratch_operands = 0 : i64, tpu.core_type = #tpu.core_type<tc>, window_params = [{pipeline_mode = #tpu.pipeline_mode<synchronous>, transform_indices = @transform_0, window_bounds = array<i64: 1, 128>}, {pipeline_mode = #tpu.pipeline_mode<synchronous>, transform_indices = @transform_1, window_bounds = array<i64: 1, 128>}, {transform_indices = @transform_2, window_bounds = array<i64: 1, 1, 8, 4, 128>}, {transform_indices = @transform_3, window_bounds = array<i64: 1, 1, 8, 4, 128>}, {transform_indices = @transform_4, window_bounds = array<i64: 1, 1, 8, 4, 128>}, {transform_indices = @transform_5, window_bounds = array<i64: 1, 1, 4, 4, 64>}]} {
    %c0 = arith.constant 0 : index
    %c0_0 = arith.constant 0 : index
    %0 = vector.load %arg2[%c0, %c0_0] : memref<1x128xbf16, #tpu.memory_space<vmem>>, vector<1x128xbf16>
    %c0_1 = arith.constant 0 : index
    %c0_2 = arith.constant 0 : index
    %1 = vector.load %arg3[%c0_1, %c0_2] : memref<1x128xbf16, #tpu.memory_space<vmem>>, vector<1x128xbf16>
    %c0_3 = arith.constant 0 : index
    %c0_4 = arith.constant 0 : index
    %c0_5 = arith.constant 0 : index
    %c0_6 = arith.constant 0 : index
    %c0_7 = arith.constant 0 : index
    %2 = vector.load %arg5[%c0_3, %c0_4, %c0_5, %c0_6, %c0_7] : memref<1x1x8x4x128xbf16, #tpu.memory_space<vmem>>, vector<1x1x8x4x128xbf16>
    %3 = vector.shape_cast %2 : vector<1x1x8x4x128xbf16> to vector<8x4x128xbf16>
    %4 = vector.shape_cast %0 : vector<1x128xbf16> to vector<1x1x128xbf16>
    %5 = vector.broadcast %4 : vector<1x1x128xbf16> to vector<8x4x128xbf16>
    %6 = arith.mulf %3, %5 : vector<8x4x128xbf16>
    %7 = vector.shape_cast %1 : vector<1x128xbf16> to vector<1x1x128xbf16>
    %8 = vector.broadcast %7 : vector<1x1x128xbf16> to vector<8x4x128xbf16>
    %9 = arith.addf %6, %8 : vector<8x4x128xbf16>
    %cst = arith.constant 0.000000e+00 : bf16
    %10 = vector.broadcast %cst : bf16 to vector<8x4x128xbf16>
    %11 = arith.maximumf %9, %10 : vector<8x4x128xbf16>
    %12 = vector.extract_strided_slice %11 {offsets = [0, 0, 0], sizes = [8, 4, 64], strides = [1, 1, 1]} : vector<8x4x128xbf16> to vector<8x4x64xbf16>
    %13 = vector.extract_strided_slice %11 {offsets = [0, 0, 64], sizes = [8, 4, 64], strides = [1, 1, 1]} : vector<8x4x128xbf16> to vector<8x4x64xbf16>
    %cst_8 = arith.constant 0.000000e+00 : bf16
    %14 = vector.broadcast %cst_8 : bf16 to vector<8x1x64xbf16>
    %15 = vector.extract_strided_slice %13 {offsets = [0, 0, 0], sizes = [8, 3, 64], strides = [1, 1, 1]} : vector<8x4x64xbf16> to vector<8x3x64xbf16>
    %16 = tpu.concatenate %14, %15 in 1 : vector<8x1x64xbf16>, vector<8x3x64xbf16> -> vector<8x4x64xbf16>
    %17 = arith.maximumf %12, %13 : vector<8x4x64xbf16>
    %18 = arith.maximumf %17, %16 : vector<8x4x64xbf16>
    %19 = vector.shape_cast %18 : vector<8x4x64xbf16> to vector<4x2x4x64xbf16>
    %20 = vector.extract_strided_slice %19 {offsets = [0, 0, 0, 0], sizes = [4, 1, 4, 64], strides = [1, 1, 1, 1]} : vector<4x2x4x64xbf16> to vector<4x1x4x64xbf16>
    %21 = vector.shape_cast %20 : vector<4x1x4x64xbf16> to vector<4x4x64xbf16>
    %22 = vector.extract_strided_slice %19 {offsets = [0, 1, 0, 0], sizes = [4, 1, 4, 64], strides = [1, 1, 1, 1]} : vector<4x2x4x64xbf16> to vector<4x1x4x64xbf16>
    %23 = vector.shape_cast %22 : vector<4x1x4x64xbf16> to vector<4x4x64xbf16>
    %cst_9 = arith.constant 0.000000e+00 : bf16
    %24 = vector.broadcast %cst_9 : bf16 to vector<1x4x64xbf16>
    %25 = vector.extract_strided_slice %23 {offsets = [0, 0, 0], sizes = [3, 4, 64], strides = [1, 1, 1]} : vector<4x4x64xbf16> to vector<3x4x64xbf16>
    %26 = tpu.concatenate %24, %25 in 0 : vector<1x4x64xbf16>, vector<3x4x64xbf16> -> vector<4x4x64xbf16>
    %27 = arith.maximumf %21, %23 : vector<4x4x64xbf16>
    %28 = arith.maximumf %27, %26 : vector<4x4x64xbf16>
    %c0_10 = arith.constant 0 : index
    %c0_11 = arith.constant 0 : index
    %c0_12 = arith.constant 0 : index
    %c0_13 = arith.constant 0 : index
    %c0_14 = arith.constant 0 : index
    %29 = vector.load %arg4[%c0_10, %c0_11, %c0_12, %c0_13, %c0_14] : memref<1x1x8x4x128xbf16, #tpu.memory_space<vmem>>, vector<1x1x8x4x128xbf16>
    %30 = vector.shape_cast %29 : vector<1x1x8x4x128xbf16> to vector<8x4x128xbf16>
    %31 = vector.shape_cast %0 : vector<1x128xbf16> to vector<1x1x128xbf16>
    %32 = vector.broadcast %31 : vector<1x1x128xbf16> to vector<8x4x128xbf16>
    %33 = arith.mulf %30, %32 : vector<8x4x128xbf16>
    %34 = vector.shape_cast %1 : vector<1x128xbf16> to vector<1x1x128xbf16>
    %35 = vector.broadcast %34 : vector<1x1x128xbf16> to vector<8x4x128xbf16>
    %36 = arith.addf %33, %35 : vector<8x4x128xbf16>
    %cst_15 = arith.constant 0.000000e+00 : bf16
    %37 = vector.broadcast %cst_15 : bf16 to vector<8x4x128xbf16>
    %38 = arith.maximumf %36, %37 : vector<8x4x128xbf16>
    %39 = vector.extract_strided_slice %38 {offsets = [0, 0, 0], sizes = [8, 4, 64], strides = [1, 1, 1]} : vector<8x4x128xbf16> to vector<8x4x64xbf16>
    %40 = vector.extract_strided_slice %38 {offsets = [0, 0, 64], sizes = [8, 4, 64], strides = [1, 1, 1]} : vector<8x4x128xbf16> to vector<8x4x64xbf16>
    %cst_16 = arith.constant 0.000000e+00 : bf16
    %41 = vector.broadcast %cst_16 : bf16 to vector<8x1x64xbf16>
    %42 = vector.extract_strided_slice %40 {offsets = [0, 0, 0], sizes = [8, 3, 64], strides = [1, 1, 1]} : vector<8x4x64xbf16> to vector<8x3x64xbf16>
    %43 = tpu.concatenate %41, %42 in 1 : vector<8x1x64xbf16>, vector<8x3x64xbf16> -> vector<8x4x64xbf16>
    %44 = arith.maximumf %39, %40 : vector<8x4x64xbf16>
    %45 = arith.maximumf %44, %43 : vector<8x4x64xbf16>
    %46 = vector.shape_cast %45 : vector<8x4x64xbf16> to vector<4x2x4x64xbf16>
    %47 = vector.extract_strided_slice %46 {offsets = [0, 0, 0, 0], sizes = [4, 1, 4, 64], strides = [1, 1, 1, 1]} : vector<4x2x4x64xbf16> to vector<4x1x4x64xbf16>
    %48 = vector.shape_cast %47 : vector<4x1x4x64xbf16> to vector<4x4x64xbf16>
    %49 = vector.extract_strided_slice %46 {offsets = [0, 1, 0, 0], sizes = [4, 1, 4, 64], strides = [1, 1, 1, 1]} : vector<4x2x4x64xbf16> to vector<4x1x4x64xbf16>
    %50 = vector.shape_cast %49 : vector<4x1x4x64xbf16> to vector<4x4x64xbf16>
    %cst_17 = arith.constant 0.000000e+00 : bf16
    %51 = vector.broadcast %cst_17 : bf16 to vector<1x4x64xbf16>
    %52 = vector.extract_strided_slice %50 {offsets = [0, 0, 0], sizes = [3, 4, 64], strides = [1, 1, 1]} : vector<4x4x64xbf16> to vector<3x4x64xbf16>
    %53 = tpu.concatenate %51, %52 in 0 : vector<1x4x64xbf16>, vector<3x4x64xbf16> -> vector<4x4x64xbf16>
    %54 = arith.maximumf %48, %50 : vector<4x4x64xbf16>
    %55 = arith.maximumf %54, %53 : vector<4x4x64xbf16>
    %c0_i32 = arith.constant 0 : i32
    %56 = arith.cmpi sgt, %arg1, %c0_i32 : i32
    %57 = arith.extui %56 : i1 to i32
    %58 = arith.sitofp %57 : i32 to f32
    %59 = arith.truncf %58 : f32 to bf16
    %60 = vector.broadcast %59 : bf16 to vector<4x4x64xbf16>
    %61 = arith.mulf %55, %60 : vector<4x4x64xbf16>
    %c0_18 = arith.constant 0 : index
    %c0_19 = arith.constant 0 : index
    %c0_20 = arith.constant 0 : index
    %c0_21 = arith.constant 0 : index
    %c0_22 = arith.constant 0 : index
    %62 = vector.load %arg6[%c0_18, %c0_19, %c0_20, %c0_21, %c0_22] : memref<1x1x8x4x128xbf16, #tpu.memory_space<vmem>>, vector<1x1x8x4x128xbf16>
    %63 = vector.shape_cast %62 : vector<1x1x8x4x128xbf16> to vector<8x4x128xbf16>
    %64 = vector.shape_cast %0 : vector<1x128xbf16> to vector<1x1x128xbf16>
    %65 = vector.broadcast %64 : vector<1x1x128xbf16> to vector<8x4x128xbf16>
    %66 = arith.mulf %63, %65 : vector<8x4x128xbf16>
    %67 = vector.shape_cast %1 : vector<1x128xbf16> to vector<1x1x128xbf16>
    %68 = vector.broadcast %67 : vector<1x1x128xbf16> to vector<8x4x128xbf16>
    %69 = arith.addf %66, %68 : vector<8x4x128xbf16>
    %cst_23 = arith.constant 0.000000e+00 : bf16
    %70 = vector.broadcast %cst_23 : bf16 to vector<8x4x128xbf16>
    %71 = arith.maximumf %69, %70 : vector<8x4x128xbf16>
    %72 = vector.extract_strided_slice %71 {offsets = [0, 0, 0], sizes = [8, 4, 64], strides = [1, 1, 1]} : vector<8x4x128xbf16> to vector<8x4x64xbf16>
    %73 = vector.extract_strided_slice %71 {offsets = [0, 0, 64], sizes = [8, 4, 64], strides = [1, 1, 1]} : vector<8x4x128xbf16> to vector<8x4x64xbf16>
    %cst_24 = arith.constant 0.000000e+00 : bf16
    %74 = vector.broadcast %cst_24 : bf16 to vector<8x1x64xbf16>
    %75 = vector.extract_strided_slice %73 {offsets = [0, 0, 0], sizes = [8, 3, 64], strides = [1, 1, 1]} : vector<8x4x64xbf16> to vector<8x3x64xbf16>
    %76 = tpu.concatenate %74, %75 in 1 : vector<8x1x64xbf16>, vector<8x3x64xbf16> -> vector<8x4x64xbf16>
    %77 = arith.maximumf %72, %73 : vector<8x4x64xbf16>
    %78 = arith.maximumf %77, %76 : vector<8x4x64xbf16>
    %79 = vector.shape_cast %78 : vector<8x4x64xbf16> to vector<4x2x4x64xbf16>
    %80 = vector.extract_strided_slice %79 {offsets = [0, 0, 0, 0], sizes = [4, 1, 4, 64], strides = [1, 1, 1, 1]} : vector<4x2x4x64xbf16> to vector<4x1x4x64xbf16>
    %81 = vector.shape_cast %80 : vector<4x1x4x64xbf16> to vector<4x4x64xbf16>
    %82 = vector.extract_strided_slice %79 {offsets = [0, 1, 0, 0], sizes = [4, 1, 4, 64], strides = [1, 1, 1, 1]} : vector<4x2x4x64xbf16> to vector<4x1x4x64xbf16>
    %83 = vector.shape_cast %82 : vector<4x1x4x64xbf16> to vector<4x4x64xbf16>
    %cst_25 = arith.constant 0.000000e+00 : bf16
    %84 = vector.broadcast %cst_25 : bf16 to vector<1x4x64xbf16>
    %85 = vector.extract_strided_slice %83 {offsets = [0, 0, 0], sizes = [3, 4, 64], strides = [1, 1, 1]} : vector<4x4x64xbf16> to vector<3x4x64xbf16>
    %86 = tpu.concatenate %84, %85 in 0 : vector<1x4x64xbf16>, vector<3x4x64xbf16> -> vector<4x4x64xbf16>
    %87 = arith.maximumf %81, %83 : vector<4x4x64xbf16>
    %88 = arith.maximumf %87, %86 : vector<4x4x64xbf16>
    %c3_i32 = arith.constant 3 : i32
    %89 = arith.cmpi slt, %arg1, %c3_i32 : i32
    %90 = arith.extui %89 : i1 to i32
    %91 = arith.sitofp %90 : i32 to f32
    %92 = arith.truncf %91 : f32 to bf16
    %93 = vector.broadcast %92 : bf16 to vector<4x4x64xbf16>
    %94 = arith.mulf %88, %93 : vector<4x4x64xbf16>
    %95 = arith.maximumf %28, %61 : vector<4x4x64xbf16>
    %96 = arith.maximumf %95, %94 : vector<4x4x64xbf16>
    %97 = arith.extf %96 : vector<4x4x64xbf16> to vector<4x4x64xf32>
    %c0_26 = arith.constant 0 : index
    %c0_27 = arith.constant 0 : index
    %c0_28 = arith.constant 0 : index
    %c0_29 = arith.constant 0 : index
    %c0_30 = arith.constant 0 : index
    %98 = vector.load %arg7[%c0_26, %c0_27, %c0_28, %c0_29, %c0_30] : memref<1x1x4x4x64xf32, #tpu.memory_space<vmem>>, vector<1x1x4x4x64xf32>
    %99 = vector.shape_cast %98 : vector<1x1x4x4x64xf32> to vector<4x4x64xf32>
    %100 = vector.shape_cast %97 : vector<4x4x64xf32> to vector<1x1x4x4x64xf32>
    tpu.vector_store %arg7[%c0_26, %c0_27, %c0_28, %c0_29, %c0_30], %100 {strides = array<i32>} : memref<1x1x4x4x64xf32, #tpu.memory_space<vmem>>, vector<1x1x4x4x64xf32>,
    return
  }
  func.func @transform_0(%arg0: i32, %arg1: i32) -> (i32, i32) {
    %c0_i32 = arith.constant 0 : i32
    %c0_i32_0 = arith.constant 0 : i32
    %c0_i32_1 = arith.constant 0 : i32
    return %c0_i32, %c0_i32_0 : i32, i32
  }
  func.func @transform_1(%arg0: i32, %arg1: i32) -> (i32, i32) {
    %c0_i32 = arith.constant 0 : i32
    %c0_i32_0 = arith.constant 0 : i32
    %c0_i32_1 = arith.constant 0 : i32
    return %c0_i32, %c0_i32_0 : i32, i32
  }
  func.func @transform_2(%arg0: i32, %arg1: i32) -> (i32, i32, i32, i32, i32) {
    %c1_i32 = arith.constant 1 : i32
    %0 = arith.subi %arg1, %c1_i32 : i32
    %c0_i32 = arith.constant 0 : i32
    %1 = arith.maxsi %0, %c0_i32 : i32
    %c0_i32_0 = arith.constant 0 : i32
    %c0_i32_1 = arith.constant 0 : i32
    %c0_i32_2 = arith.constant 0 : i32
    %c0_i32_3 = arith.constant 0 : i32
    return %arg0, %1, %c0_i32_0, %c0_i32_1, %c0_i32_2 : i32, i32, i32, i32, i32
  }
  func.func @transform_3(%arg0: i32, %arg1: i32) -> (i32, i32, i32, i32, i32) {
    %c0_i32 = arith.constant 0 : i32
    %c0_i32_0 = arith.constant 0 : i32
    %c0_i32_1 = arith.constant 0 : i32
    %c0_i32_2 = arith.constant 0 : i32
    return %arg0, %arg1, %c0_i32, %c0_i32_0, %c0_i32_1 : i32, i32, i32, i32, i32
  }
  func.func @transform_4(%arg0: i32, %arg1: i32) -> (i32, i32, i32, i32, i32) {
    %c1_i32 = arith.constant 1 : i32
    %0 = arith.addi %arg1, %c1_i32 : i32
    %c3_i32 = arith.constant 3 : i32
    %1 = arith.minsi %0, %c3_i32 : i32
    %c0_i32 = arith.constant 0 : i32
    %c0_i32_0 = arith.constant 0 : i32
    %c0_i32_1 = arith.constant 0 : i32
    %c0_i32_2 = arith.constant 0 : i32
    return %arg0, %1, %c0_i32, %c0_i32_0, %c0_i32_1 : i32, i32, i32, i32, i32
  }
  func.func @transform_5(%arg0: i32, %arg1: i32) -> (i32, i32, i32, i32, i32) {
    %c0_i32 = arith.constant 0 : i32
    %c0_i32_0 = arith.constant 0 : i32
    %c0_i32_1 = arith.constant 0 : i32
    %c0_i32_2 = arith.constant 0 : i32
    return %arg0, %arg1, %c0_i32, %c0_i32_0, %c0_i32_1 : i32, i32, i32, i32, i32
  }
}

</mosaic_0001>

<bundles_post_ra>
// kernel: res1_forward.2
= control target key start
LH: loop header
LB: loop body
LE: loop exit
PB: predicated region body
PF: predicated region fallthrough
CT: control target
= control target key end

     0   :  { %s1344_s15 = smov 0   ;;  %s1624_s0 = inlined_call_operand.vmem [shape: bf16[8,2,2,24,44], index: 0, kind: input, shape index: {}]   ;;  %s1625_s1 = inlined_call_operand.vmem [shape: bf16[168,64], index: 1, kind: input, shape index: {}]   ;;  %s1626_s2 = inlined_call_operand.vmem [shape: bf16[8,32,128], index: 2, kind: output, shape index: {0}]   ;;  %s1627_s3 = inlined_call_operand.vmem [shape: f32[8,1,128], index: 3, kind: output, shape index: {1}]   ;;  %s1628_s4 = inlined_call_operand.vmem [shape: f32[8,1,128], index: 4, kind: output, shape index: {2}]  }
   0x1 LB: > { %s1156_s16 = sadd.s32 4294967295, %s1312_s15   ;;  %p1160_p0 = scmp.ge.s32.totalorder %s1312_s15, 1  ;;  %s1312_s15 = sphi %s1344_s15, %s15_s15  }
   0x2   : > { %p167_p1 = scmp.lt.s32.totalorder %s1312_s15, 9 }
   0x4   : > { %p168_p2 = pnand %p1160_p0, %p167_p1 }
   0x5   : > { %p199_p3 = scmp.lt.s32.totalorder (!%p168_p2), %s1156_s16, 7  ;;  %s1314_s21 = smov (!%p168_p2), 124   ;;  %vm219_vm0 = vcmask (!%p168_p2), 257024   ;;  %v1274_v47 = vld [vmem:[%s1625_s1] sm:$0xff] (!%p168_p2)   ;;  %v1317_v48 = vmov (!%p168_p2), 0   ;;  %v1275_v49 = vld [vmem:[%s1625_s1 + $0x8] sm:$0xff] (!%p168_p2)  }
   0x6   : > { %171 = sbr.rel (%p168_p2) target bundleno = 647 (0x287), region = 28  ;;  %s1315_s22 = smov (!%p168_p2), 120   ;;  %928 = vmatprep.subr.bf16.mxu1 (!%p168_p2), %v1317_v48  ;;  %532 = vmatprep.subr.bf16.mxu0 (!%p168_p2), %v1317_v48  ;;  %v1276_v51 = vld [vmem:[%s1625_s1 + $0x10] sm:$0xff] (!%p168_p2)   ;;  %v1277_v52 = vld [vmem:[%s1625_s1 + $0x18] sm:$0xff] (!%p168_p2)   ;;  %v1278_v53 = vld [vmem:[%s1625_s1 + $0x20] sm:$0xff] (!%p168_p2)   ;;  %vm528_vm1 = vcmask (!%p168_p2), 1043456  }
   0x7   : > { %s1316_s23 = smov (!%p168_p2), 116   ;;  %929 = vmatpush1.bf16.msra.mxu1 (!%p168_p2), %v1274_v47  ;;  %v1279_v54 = vld [vmem:[%s1625_s1 + $0x28] sm:$0xff] (!%p168_p2)   ;;  %v1280_v57 = vld [vmem:[%s1625_s1 + $0x30] sm:$0xff] (!%p168_p2)   ;;  %v1281_v60 = vld [vmem:[%s1625_s1 + $0x38] sm:$0xff] (!%p168_p2)   ;;  %vm521_vm2 = vcmask (!%p168_p2), 326656   ;;  %vm581_vm3 = vcmask (!%p168_p2), 523264  }
   0x8   : > { %930 = vmatprep.subr.bf16.mxu1 (!%p168_p2), %v1317_v48  ;;  %v1282_v63 = vld [vmem:[%s1625_s1 + $0x40] sm:$0xff] (!%p168_p2)  }
   0xb   : > { %931 = vmatpush1.bf16.msra.mxu1 (!%p168_p2), %v1275_v49 }
   0xc   : > { %932 = vmatprep.subr.bf16.mxu1 (!%p168_p2), %v1317_v48 }
   0xd   : > { %s1630_s16 = smov (!%p199_p3, %s1156_s16), 7 }
   0xe   : > { %s1249_s17 = smul.u32 48, %s1630_s16  ;;  %s211_s27 = scalar_lea.vmem %s1627_s3, %s1630_s16 }
   0xf   : > { %933 = vmatpush1.bf16.msra.mxu1 %v1276_v51  ;;  %s214_s30 = scalar_lea.vmem %s1628_s4, %s1630_s16 }
  0x10   : > { %s1358_s20 = scalar_lea.vmem %s1624_s0, %s1249_s17  ;;  %934 = vmatprep.subr.bf16.mxu1 %v1317_v48 }
  0x11   : > { %v232_v0 = vld [vmem:[%s1358_s20 + $0x8] sm:$0xf]  ;;  %v230_v1 = vld [vmem:[%s1358_s20] sm:$0xf]  ;;  %v1167_v2 = vld [vmem:[%s1358_s20 + $0x18] sm:$0xf] }
  0x12   : > { %240 = vrot.lane.b32.xlu1 %v232_v0, %s1314_s21  ;;  %236 = vrot.lane.b32.xlu0 %v230_v1, %s1314_s21  ;;  %v231_v3 = vld [vmem:[%s1358_s20 + $0x4] sm:$0xf]  ;;  %v1172_v4 = vld [vmem:[%s1358_s20 + $0x20] sm:$0xf] }
  0x13   : > { %v1171_v5 = vld [vmem:[%s1358_s20 + $0x1c] sm:$0xf]  ;;  %v1169_v6 = vld [vmem:[%s1358_s20 + $0x20] sm:$0xf]  ;;  %v217_v9 = vld [vmem:[%s1358_s20 + $0x4] sm:$0xf]  ;;  %935 = vmatpush1.bf16.msra.mxu1 %v1277_v52 }
  0x14   : > { %v1168_v7 = vld [vmem:[%s1358_s20 + $0x1c] sm:$0xf]  ;;  %v216_v8 = vld [vmem:[%s1358_s20] sm:$0xf]  ;;  %221 = vst.msk [vmem:[#allocation2 + $0x4] sm:$0xf] %vm219_vm0, %v217_v9  ;;  %936 = vmatprep.subr.bf16.mxu1 %v1317_v48 }
  0x15   : > { %220 = vst.msk [vmem:[#allocation2] sm:$0xf] %vm219_vm0, %v216_v8  ;;  %v218_v10 = vld [vmem:[%s1358_s20 + $0x8] sm:$0xf]  ;;  %v1164_v11 = vld [vmem:[%s1358_s20 + $0x18] sm:$0xf] }
  0x16   : > { %254 = vrot.lane.b32.xlu1 %v1167_v2, %s1314_s21  ;;  %238 = vrot.lane.b32.xlu0 %v231_v3, %s1314_s21  ;;  %v303_v12 = vld [vmem:[%s1358_s20 + $0x4] sm:$0xf]  ;;  %v302_v13 = vld [vmem:[%s1358_s20] sm:$0xf]  ;;  %222 = vst.msk [vmem:[#allocation2 + $0x8] sm:$0xf] %vm219_vm0, %v218_v10 }
  0x17   : > { %227 = vst.msk [vmem:[#allocation2 + $0xc] sm:$0xf] %vm219_vm0, %v1164_v11  ;;  %v1165_v14 = vld [vmem:[%s1358_s20 + $0x1c] sm:$0xf]  ;;  %v1166_v15 = vld [vmem:[%s1358_s20 + $0x20] sm:$0xf]  ;;  %937 = vmatpush1.bf16.msra.mxu1 %v1278_v53 }
  0x18   : > { %v1197_v16 = vld [vmem:[%s1358_s20 + $0xc] sm:$0xf]  ;;  %v1198_v17 = vld [vmem:[%s1358_s20 + $0x10] sm:$0xf]  ;;  %228 = vst.msk [vmem:[#allocation2 + $0x10] sm:$0xf] %vm219_vm0, %v1165_v14  ;;  %938 = vmatprep.subr.bf16.mxu1 %v1317_v48 }
  0x19   : > { %229 = vst.msk [vmem:[#allocation2 + $0x14] sm:$0xf] %vm219_vm0, %v1166_v15  ;;  %v267_v18 = vld [vmem:[%s1358_s20 + $0x4] sm:$0xf]  ;;  %v266_v19 = vld [vmem:[%s1358_s20] sm:$0xf] }
  0x1a   : > { %294 = vrot.lane.b32.xlu1 %v1172_v4, %s1315_s22  ;;  %292 = vrot.lane.b32.xlu0 %v1171_v5, %s1315_s22  ;;  %v1199_v20 = vld [vmem:[%s1358_s20 + $0x14] sm:$0xf]  ;;  %v1200_v21 = vld [vmem:[%s1358_s20 + $0x24] sm:$0xf] }
  0x1b   : > { %v1201_v22 = vld [vmem:[%s1358_s20 + $0x28] sm:$0xf]  ;;  %v1202_v23 = vld [vmem:[%s1358_s20 + $0x2c] sm:$0xf]  ;;  %v1170_v30 = vld [vmem:[%s1358_s20 + $0x18] sm:$0xf]  ;;  %939 = vmatpush1.bf16.msra.mxu1 %v1279_v54 }
  0x1c   : > { %v1400_v24 = vld [vmem:[#allocation2] sm:$0xff]   ;;  %v268_v25 = vld [vmem:[%s1358_s20 + $0x8] sm:$0xf]  ;;  %v1203_v29 = vld [vmem:[%s1358_s20 + $0xc] sm:$0xf]  ;;  %940 = vmatprep.subr.bf16.mxu1 %v1317_v48 }
  0x1d   : > { %v304_v26 = vld [vmem:[%s1358_s20 + $0x8] sm:$0xf]  ;;  %618 = vst.msk [vmem:[#allocation2] sm:$0xf] %vm219_vm0, %v1197_v16  ;;  %619 = vst.msk [vmem:[#allocation2 + $0x4] sm:$0xf] %vm219_vm0, %v1198_v17 }
  0x1e   : > { %258 = vrot.lane.b32.xlu1 %v1169_v6, %s1314_s21  ;;  %256 = vrot.lane.b32.xlu0 %v1168_v7, %s1314_s21  ;;  %v1406_v27 = vld [vmem:[#allocation2 + $0x8] sm:$0xff]   ;;  %v1205_v31 = vld [vmem:[%s1358_s20 + $0x14] sm:$0xf]  ;;  %v1204_v32 = vld [vmem:[%s1358_s20 + $0x10] sm:$0xf] }
  0x1f   : > { %620 = vst.msk [vmem:[#allocation2 + $0x8] sm:$0xf] %vm219_vm0, %v1199_v20  ;;  %625 = vst.msk [vmem:[#allocation2 + $0xc] sm:$0xf] %vm219_vm0, %v1200_v21  ;;  %v1213_v33 = vld [vmem:[%s1358_s20 + $0x28] sm:$0xf]  ;;  %941 = vmatpush1.bf16.msra.mxu1 %v1280_v57 }
  0x20   : > { %v1412_v28 = vld [vmem:[#allocation2 + $0x10] sm:$0xff]   ;;  %v1206_v34 = vld [vmem:[%s1358_s20 + $0x24] sm:$0xf]  ;;  %v1207_v35 = vld [vmem:[%s1358_s20 + $0x28] sm:$0xf]  ;;  %942 = vmatprep.subr.bf16.mxu1 %v1317_v48 }
  0x21   : > { %626 = vst.msk [vmem:[#allocation2 + $0x10] sm:$0xf] %vm219_vm0, %v1201_v22  ;;  %627 = vst.msk [vmem:[#allocation2 + $0x14] sm:$0xf] %vm219_vm0, %v1202_v23  ;;  %v1214_v36 = vld [vmem:[%s1358_s20 + $0x2c] sm:$0xf] }
  0x22   : > { %310 = vrot.lane.b32.xlu1 %v303_v12, %s1316_s23  ;;  %308 = vrot.lane.b32.xlu0 %v302_v13, %s1316_s23  ;;  %v1215_v37 = vld [vmem:[%s1358_s20 + $0xc] sm:$0xf]  ;;  %v1216_v40 = vld [vmem:[%s1358_s20 + $0x10] sm:$0xf] }
  0x23   : > { %v1208_v38 = vld [vmem:[%s1358_s20 + $0x2c] sm:$0xf]  ;;  %v1217_v41 = vld [vmem:[%s1358_s20 + $0x14] sm:$0xf]  ;;  %v1210_v42 = vld [vmem:[%s1358_s20 + $0x10] sm:$0xf]  ;;  %943 = vmatpush1.bf16.msra.mxu1 %v1281_v60 }
  0x24   : > { %v1209_v39 = vld [vmem:[%s1358_s20 + $0xc] sm:$0xf]  ;;  %v1212_v43 = vld [vmem:[%s1358_s20 + $0x24] sm:$0xf]  ;;  %v1211_v44 = vld [vmem:[%s1358_s20 + $0x14] sm:$0xf]  ;;  %944 = vmatprep.subr.bf16.mxu1 %v1317_v48 }
  0x25   : > { %v1263_v45 = vld [vmem:[#allocation2] sm:$0xff]   ;;  %v1283_v2 = vld [vmem:[%s1625_s1 + $0x48] sm:$0xff]   ;;  %v1284_v3 = vld [vmem:[%s1625_s1 + $0x50] ss:$0 sps:$4 sm:$0xff]   ;;  %s1318_s20 = smov 64  }
  0x26   : > { %274 = vrot.lane.b32.xlu1 %v267_v18, %s1315_s22  ;;  %272 = vrot.lane.b32.xlu0 %v266_v19, %s1315_s22  ;;  %v1264_v46 = vld [vmem:[#allocation2 + $0x8] sm:$0xff]   ;;  %v926_v6 = vsel %vm528_vm1, %v1284_v3, 0  ;;  %v1285_v20 = vld [vmem:[%s1625_s1] sm:$0xff]   ;;  %v1292_v53 = vld [vmem:[%s1625_s1 + $0x38] sm:$0xff]  }
  0x27   : > { %945 = vmatpush1.bf16.msra.mxu1 %v1282_v63  ;;  %v1286_v22 = vld [vmem:[%s1625_s1 + $0x8] sm:$0xff]   ;;  %533 = vmatpush1.bf16.msra.mxu0 %v1285_v20 }
  0x28   : > { %v1265_v50 = vld [vmem:[#allocation2 + $0x10] sm:$0xff]   ;;  %946 = vmatprep.subr.bf16.mxu1 %v1317_v48  ;;  %534 = vmatprep.subr.bf16.mxu0 %v1317_v48  ;;  %v1294_v57 = vld [vmem:[%s1625_s1 + $0x48] sm:$0xff]  }
  0x2a   : > { %276 = vrot.lane.b32.xlu1 %v268_v25, %s1315_s22  ;;  %312 = vrot.lane.b32.xlu0 %v304_v26, %s1316_s23 }
  0x2b   : > { %947 = vmatpush1.bf16.msra.mxu1 %v1283_v2  ;;  %535 = vmatpush1.bf16.msra.mxu0 %v1286_v22 }
  0x2c   : > { %948 = vmatprep.subr.bf16.mxu1 %v1317_v48  ;;  %536 = vmatprep.subr.bf16.mxu0 %v1317_v48 }
  0x2e   : > { %634 = vrot.lane.b32.xlu1 %v1203_v29, %s1314_s21  ;;  %290 = vrot.lane.b32.xlu0 %v1170_v30, %s1315_s22  ;;  %v1287_v30 = vld [vmem:[%s1625_s1 + $0x10] sm:$0xff]  }
  0x2f   : > { %949 = vmatpush1.bf16.msra.mxu1 %v926_v6  ;;  %537 = vmatpush1.bf16.msra.mxu0 %v1287_v30 }
  0x30   : > { %538 = vmatprep.subr.bf16.mxu0 %v1317_v48 }
  0x32   : > { %638 = vrot.lane.b32.xlu1 %v1205_v31, %s1314_s21  ;;  %636 = vrot.lane.b32.xlu0 %v1204_v32, %s1314_s21 }
  0x36   : > { %690 = vrot.lane.b32.xlu1 %v1213_v33, %s1315_s22  ;;  %652 = vrot.lane.b32.xlu0 %v1206_v34, %s1314_s21 }
  0x3a   : > { %654 = vrot.lane.b32.xlu1 %v1207_v35, %s1314_s21  ;;  %692 = vrot.lane.b32.xlu0 %v1214_v36, %s1315_s22  ;;  %v1288_v35 = vld [vmem:[%s1625_s1 + $0x18] sm:$0xff]  }
  0x3b   : > { %539 = vmatpush1.bf16.msra.mxu0 %v1288_v35 }
  0x3c   : > { %540 = vmatprep.subr.bf16.mxu0 %v1317_v48 }
  0x3e   : > { %706 = vrot.lane.b32.xlu1 %v1215_v37, %s1316_s23  ;;  %656 = vrot.lane.b32.xlu0 %v1208_v38, %s1314_s21  ;;  %s1248_s21 = sshll.u32 %s1630_s16, 4 }
  0x3f   : > { %s208_s24 = scalar_lea.vmem %s1626_s2, %s1248_s21 }
  0x42   : > { %670 = vrot.lane.b32.xlu1 %v1209_v39, %s1315_s22  ;;  %708 = vrot.lane.b32.xlu0 %v1216_v40, %s1316_s23  ;;  %v1289_v40 = vld [vmem:[%s1625_s1 + $0x20] sm:$0xff]  }
  0x43   : > { %541 = vmatpush1.bf16.msra.mxu0 %v1289_v40 }
  0x44   : > { %542 = vmatprep.subr.bf16.mxu0 %v1317_v48 }
  0x46   : > { %710 = vrot.lane.b32.xlu1 %v1217_v41, %s1316_s23  ;;  %672 = vrot.lane.b32.xlu0 %v1210_v42, %s1315_s22 }
  0x4a   : > { %688 = vrot.lane.b32.xlu1 %v1212_v43, %s1315_s22  ;;  %674 = vrot.lane.b32.xlu0 %v1211_v44, %s1315_s22 }
  0x6d   : > { %824 = vxpose.xlu1.c.b16.start [1/8] (narrow) %v1263_v45, 32  ;;  %v1290_v45 = vld [vmem:[%s1625_s1 + $0x28] sm:$0xff]  }
  0x6e   : > { %543 = vmatpush1.bf16.msra.mxu0 %v1290_v45 }
  0x6f   : > { %544 = vmatprep.subr.bf16.mxu0 %v1317_v48 }
  0x71   : > { %825 = vxpose.xlu1.c.b16.cont [2/8] (narrow) %v1264_v46, 32 }
  0x75   : > { %826 = vxpose.xlu1.c.b16.cont [3/8] (narrow) %v1265_v50, 32  ;;  %v1291_v50 = vld [vmem:[%s1625_s1 + $0x30] sm:$0xff]  }
  0x76   : > { %545 = vmatpush1.bf16.msra.mxu0 %v1291_v50 }
  0x77   : > { %546 = vmatprep.subr.bf16.mxu0 %v1317_v48 }
  0x7a   : > { %547 = vmatpush1.bf16.msra.mxu0 %v1292_v53 }
  0x7b   : > { %548 = vmatprep.subr.bf16.mxu0 %v1317_v48 }
  0x84   : > { %v241_v55 = vpop.permute.xlu1 %240  ;;  %v237_v56 = vpop.permute.xlu0 %236 }
  0x85   : > { %247 = vst.msk [vmem:[#allocation2 + $0x20] sm:$0xf] %vm219_vm0, %v241_v55  ;;  %245 = vst.msk [vmem:[#allocation2 + $0x18] sm:$0xf] %vm219_vm0, %v237_v56  ;;  %v1293_v55 = vld [vmem:[%s1625_s1 + $0x40] sm:$0xff]  }
  0x86   : > { %549 = vmatpush1.bf16.msra.mxu0 %v1293_v55 }
  0x87   : > { %550 = vmatprep.subr.bf16.mxu0 %v1317_v48 }
  0x88   : > { %v255_v58 = vpop.permute.xlu1 %254  ;;  %v239_v59 = vpop.permute.xlu0 %238 }
  0x89   : > { %263 = vst.msk [vmem:[#allocation2 + $0x24] sm:$0xf] %vm219_vm0, %v255_v58  ;;  %246 = vst.msk [vmem:[#allocation2 + $0x1c] sm:$0xf] %vm219_vm0, %v239_v59  ;;  %v1295_v58 = vld [vmem:[%s1625_s1 + $0x50] ss:$0 sps:$4 sm:$0xff]  }
  0x8a   : > { %551 = vmatpush1.bf16.msra.mxu0 %v1294_v57  ;;  %v530_v59 = vsel %vm528_vm1, %v1295_v58, 0 }
  0x8b   : > { %552 = vmatprep.subr.bf16.mxu0 %v1317_v48 }
  0x8c   : > { %v295_v61 = vpop.permute.xlu1 %294  ;;  %v293_v62 = vpop.permute.xlu0 %292 }
  0x8d   : > { %301 = vst.msk [vmem:[#allocation2 + $0x44] sm:$0xf] %vm219_vm0, %v295_v61  ;;  %300 = vst.msk [vmem:[#allocation2 + $0x40] sm:$0xf] %vm219_vm0, %v293_v62 }
  0x8e   : > { %553 = vmatpush1.bf16.msra.mxu0 %v530_v59 }
  0x90   : > { %v259_v0 = vpop.permute.xlu1 %258  ;;  %v257_v1 = vpop.permute.xlu0 %256  ;;  %v1510_v12 = vld [vmem:[#allocation2 + $0x18] sm:$0xff]   ;;  %v1514_v14 = vld [vmem:[#allocation2 + $0x20] sm:$0xff]  }
  0x91   : > { %265 = vst.msk [vmem:[#allocation2 + $0x2c] sm:$0xf] %vm219_vm0, %v259_v0  ;;  %264 = vst.msk [vmem:[#allocation2 + $0x28] sm:$0xf] %vm219_vm0, %v257_v1 }
  0x94   : > { %v311_v4 = vpop.permute.xlu1 %310  ;;  %v309_v5 = vpop.permute.xlu0 %308  ;;  %v1518_v18 = vld [vmem:[#allocation2 + $0x40] sm:$0xff]  }
  0x95   : > { %318 = vst.msk [vmem:[#allocation2 + $0x4c] sm:$0xf] %vm219_vm0, %v311_v4  ;;  %317 = vst.msk [vmem:[#allocation2 + $0x48] sm:$0xf] %vm219_vm0, %v309_v5 }
  0x98   : > { %v275_v7 = vpop.permute.xlu1 %274  ;;  %v273_v8 = vpop.permute.xlu0 %272  ;;  %v1525_v21 = vld [vmem:[#allocation2 + $0x28] sm:$0xff]  }
  0x99   : > { %282 = vst.msk [vmem:[#allocation2 + $0x34] sm:$0xf] %vm219_vm0, %v275_v7  ;;  %281 = vst.msk [vmem:[#allocation2 + $0x30] sm:$0xf] %vm219_vm0, %v273_v8 }
  0x9c   : > { %v277_v9 = vpop.permute.xlu1 %276  ;;  %v313_v10 = vpop.permute.xlu0 %312  ;;  %v338_v29 = vld [vmem:[#allocation2 + $0x48] sm:$0xff]  }
  0x9d   : > { %283 = vst.msk [vmem:[#allocation2 + $0x38] sm:$0xf] %vm219_vm0, %v277_v9  ;;  %319 = vst.msk [vmem:[#allocation2 + $0x50] sm:$0xf] %vm219_vm0, %v313_v10 }
  0xa0   : > { %v635_v11 = vpop.permute.xlu1 %634  ;;  %v291_v13 = vpop.permute.xlu0 %290  ;;  %v332_v34 = vld [vmem:[#allocation2 + $0x30] sm:$0xff]  }
  0xa1   : > { %643 = vst.msk [vmem:[#allocation2 + $0x18] sm:$0xf] %vm219_vm0, %v635_v11  ;;  %299 = vst.msk [vmem:[#allocation2 + $0x3c] sm:$0xf] %vm219_vm0, %v291_v13 }
  0xa4   : > { %v639_v15 = vpop.permute.xlu1 %638  ;;  %v637_v16 = vpop.permute.xlu0 %636  ;;  %v340_v39 = vld [vmem:[#allocation2 + $0x50] sm:$0xf] }
  0xa5   : > { %645 = vst.msk [vmem:[#allocation2 + $0x20] sm:$0xf] %vm219_vm0, %v639_v15  ;;  %644 = vst.msk [vmem:[#allocation2 + $0x1c] sm:$0xf] %vm219_vm0, %v637_v16  ;;  %v1183_v56 = vcombine.low %v340_v39, %v340_v39 }
  0xa8   : > { %v691_v17 = vpop.permute.xlu1 %690  ;;  %v653_v19 = vpop.permute.xlu0 %652  ;;  %v335_v44 = vld [vmem:[#allocation2 + $0x38] sm:$0xff]  }
  0xa9   : > { %698 = vst.msk [vmem:[#allocation2 + $0x40] sm:$0xf] %vm219_vm0, %v691_v17  ;;  %661 = vst.msk [vmem:[#allocation2 + $0x24] sm:$0xf] %vm219_vm0, %v653_v19 }
  0xac   : > { %v655_v23 = vpop.permute.xlu1 %654  ;;  %v693_v25 = vpop.permute.xlu0 %692  ;;  %v1266_v26 = vld [vmem:[#allocation2 + $0x18] sm:$0xff]  }
  0xad   : > { %662 = vst.msk [vmem:[#allocation2 + $0x28] sm:$0xf] %vm219_vm0, %v655_v23  ;;  %699 = vst.msk [vmem:[#allocation2 + $0x44] sm:$0xf] %vm219_vm0, %v693_v25  ;;  %827 = vxpose.xlu1.c.b16.cont [4/8] (narrow) %v1266_v26, 32 }
  0xb0   : > { %v707_v31 = vpop.permute.xlu1 %706  ;;  %v657_v32 = vpop.permute.xlu0 %656  ;;  %v1267_v33 = vld [vmem:[#allocation2 + $0x20] sm:$0xff]  }
  0xb1   : > { %715 = vst.msk [vmem:[#allocation2 + $0x48] sm:$0xf] %vm219_vm0, %v707_v31  ;;  %663 = vst.msk [vmem:[#allocation2 + $0x2c] sm:$0xf] %vm219_vm0, %v657_v32  ;;  %828 = vxpose.xlu1.c.b16.cont [5/8] (narrow) %v1267_v33, 32 }
  0xb4   : > { %v671_v36 = vpop.permute.xlu1 %670  ;;  %v709_v37 = vpop.permute.xlu0 %708  ;;  %v1268_v38 = vld [vmem:[#allocation2 + $0x40] sm:$0xff]  }
  0xb5   : > { %679 = vst.msk [vmem:[#allocation2 + $0x30] sm:$0xf] %vm219_vm0, %v671_v36  ;;  %716 = vst.msk [vmem:[#allocation2 + $0x4c] sm:$0xf] %vm219_vm0, %v709_v37  ;;  %840 = vxpose.xlu0.c.b16.start [1/3] (short) (narrow) %v1268_v38, 32 }
  0xb8   : > { %v711_v41 = vpop.permute.xlu1 %710  ;;  %v673_v42 = vpop.permute.xlu0 %672  ;;  %v1269_v43 = vld [vmem:[#allocation2 + $0x28] sm:$0xff]  }
  0xb9   : > { %717 = vst.msk [vmem:[#allocation2 + $0x50] sm:$0xf] %vm219_vm0, %v711_v41  ;;  %680 = vst.msk [vmem:[#allocation2 + $0x34] sm:$0xf] %vm219_vm0, %v673_v42  ;;  %829 = vxpose.xlu1.c.b16.cont [6/8] (narrow) %v1269_v43, 32 }
  0xbc   : > { %v1270_v46 = vld [vmem:[#allocation2 + $0x48] sm:$0xff]   ;;  %v689_v47 = vpop.permute.xlu1 %688  ;;  %v675_v49 = vpop.permute.xlu0 %674 }
  0xbd   : > { %697 = vst.msk [vmem:[#allocation2 + $0x3c] sm:$0xf] %vm219_vm0, %v689_v47  ;;  %681 = vst.msk [vmem:[#allocation2 + $0x38] sm:$0xf] %vm219_vm0, %v675_v49  ;;  %841 = vxpose.xlu0.c.b16.cont [2/3] (short) (narrow) %v1270_v46, 32 }
  0xc0   : > { %v1271_v51 = vld [vmem:[#allocation2 + $0x50] ss:$0 sps:$4 sm:$0xff]  }
  0xc1   : > { %v1272_v52 = vld [vmem:[#allocation2 + $0x30] sm:$0xff]   ;;  %842 = vxpose.xlu0.c.b16.end [3/3] (short) (narrow) %v1271_v51, 32 }
  0xc2   : > { %830 = vxpose.xlu1.c.b16.cont [7/8] (narrow) %v1272_v52, 32 }
  0xc4   : > { %v1273_v54 = vld [vmem:[#allocation2 + $0x38] sm:$0xff]  }
  0xc5   : > { %442 = vxpose.xlu0.c.b16.start [1/3] (short) (narrow) %v1518_v18, 32 }
  0xc6   : > { %831 = vxpose.xlu1.c.b16.end [8/8] (narrow) %v1273_v54, 32 }
  0xc9   : > { %443 = vxpose.xlu0.c.b16.cont [2/3] (short) (narrow) %v338_v29, 32 }
  0xcd   : > { %444 = vxpose.xlu0.c.b16.end [3/3] (short) (narrow) %v1183_v56, 32 }
  0xd1   : > { %426 = vxpose.xlu0.c.b16.start [1/8] (narrow) %v1400_v24, 32 }
  0xd5   : > { %427 = vxpose.xlu0.c.b16.cont [2/8] (narrow) %v1406_v27, 32 }
  0xd9   : > { %428 = vxpose.xlu0.c.b16.cont [3/8] (narrow) %v1412_v28, 32 }
  0xdd   : > { %429 = vxpose.xlu0.c.b16.cont [4/8] (narrow) %v1510_v12, 32 }
  0xe1   : > { %430 = vxpose.xlu0.c.b16.cont [5/8] (narrow) %v1514_v14, 32 }
  0xe5   : > { %431 = vxpose.xlu0.c.b16.cont [6/8] (narrow) %v1525_v21, 32 }
  0xe9   : > { %432 = vxpose.xlu0.c.b16.cont [7/8] (narrow) %v332_v34, 32 }
  0xed   : > { %433 = vxpose.xlu0.c.b16.end [8/8] (narrow) %v335_v44, 32 }
 0x110   : > { %v832_v60 = vpop.trf.xlu1 }
 0x114   : > { %v833_v24 = vpop.trf.xlu1 }
 0x11f   : > { %v848_v48 = vpop.trf.xlu0 }
 0x120   : > { %1240 = vmatprep.mubr.msk.bf16.mxu1 %vm521_vm2, %v848_v48 }
 0x121   : > { %961 = vmatmul.mubr.bf16.vlgmr.msra.gmra.mrb[0].mxu1 %v832_v60 }
 0x123   : > { %v849_v61 = vpop.trf.xlu0 }
 0x124   : > { %1241 = vmatprep.mubr.msk.bf16.mxu1 %vm521_vm2, %v849_v61 }
 0x129   : > { %969 = vmatmul.mubr.bf16.gmra.mrb[4].mxu1 %v833_v24 }
 0x12b   : > { %v450_v27 = vpop.trf.xlu0 }
 0x12c   : > { %1195 = vmatprep.mubr.msk.bf16.mxu0 %vm521_vm2, %v450_v27 }
 0x12f   : > { %v451_v28 = vpop.trf.xlu0 }
 0x137   : > { %v434_v62 = vpop.trf.xlu0 }
 0x138   : > { %565 = vmatmul.mubr.bf16.vlgmr.msra.gmra.mrb[0].mxu0 %v434_v62 }
 0x139   : > { %1196 = vmatprep.mubr.msk.bf16.mxu0 %vm521_vm2, %v451_v28 }
 0x13b   : > { %v435_v63 = vpop.trf.xlu0 }
 0x140   : > { %573 = vmatmul.mubr.bf16.gmra.mrb[4].mxu0 %v435_v63 }
 0x1f4   : > { %v962_v0 = vpop.f32.mrb[0].mxu1 }
 0x1f5   : > { %v990_v1 = vmul.f32 %v962_v0, %v962_v0  ;;  %v964_v2 = vpop.f32.mrb[1].mxu1  ;;  %v977_v4 = vsel %vm581_vm3, %v962_v0, 0.0 }
 0x1f6   : > { %v965_v3 = vpop.f32.mrb[2].mxu1 }
 0x1f7   : > { %v978_v5 = vsel %vm581_vm3, %v965_v3, 0.0  ;;  %v991_v6 = vmul.f32 %v965_v3, %v965_v3  ;;  %v1007_v7 = vpack.c.bf16 %v965_v3, %v962_v0  ;;  %v967_v8 = vpop.f32.mrb[3].mxu1  ;;  %v994_v10 = vsel %vm581_vm3, %v990_v1, 0.0 }
 0x1f8   : > { %v979_v9 = vadd.f32 %v978_v5, %v977_v4 }
 0x1f9   : > { %v995_v11 = vsel %vm581_vm3, %v991_v6, 0.0  ;;  %1011 = vrot.lane.b32.xlu1 %v1007_v7, %s1318_s20 }
 0x1fa   : > { %v996_v12 = vadd.f32 %v995_v11, %v994_v10 }
 0x1fc   : > { %v970_v13 = vpop.f32.mrb[4].mxu1 }
 0x1fd   : > { %v980_v14 = vsel %vm581_vm3, %v970_v13, 0.0  ;;  %v992_v15 = vmul.f32 %v970_v13, %v970_v13  ;;  %v972_v16 = vpop.f32.mrb[5].mxu1 }
 0x1fe   : > { %v981_v17 = vadd.f32 %v980_v14, %v979_v9  ;;  %v973_v18 = vpop.f32.mrb[6].mxu1 }
 0x1ff   : > { %v997_v19 = vsel %vm581_vm3, %v992_v15, 0.0  ;;  %v982_v20 = vsel %vm581_vm3, %v973_v18, 0.0  ;;  %v993_v21 = vmul.f32 %v973_v18, %v973_v18  ;;  %v1008_v22 = vpack.c.bf16 %v973_v18, %v970_v13  ;;  %v975_v23 = vpop.f32.mrb[7].mxu1 }
 0x200   : > { %v998_v25 = vadd.f32 %v997_v19, %v996_v12  ;;  %v983_v26 = vadd.f32 %v982_v20, %v981_v17 }
 0x201   : > { %v999_v29 = vsel %vm581_vm3, %v993_v21, 0.0  ;;  %1013 = vrot.lane.b32.xlu1 %v1008_v22, %s1318_s20 }
 0x202   : > { %v984_v30 = vrot.slane %v983_v26, 4  ;;  %v1000_v31 = vadd.f32 %v999_v29, %v998_v25 }
 0x204   : > { %v985_v32 = vadd.f32 %v984_v30, %v983_v26  ;;  %v1001_v33 = vrot.slane %v1000_v31, 4 }
 0x206   : > { %v986_v34 = vrot.slane %v985_v32, 2  ;;  %v1002_v35 = vadd.f32 %v1001_v33, %v1000_v31 }
 0x208   : > { %v987_v36 = vadd.f32 %v986_v34, %v985_v32  ;;  %v1003_v37 = vrot.slane %v1002_v35, 2 }
 0x20a   : > { %v988_v38 = vrot.slane %v987_v36, 1  ;;  %v1004_v39 = vadd.f32 %v1003_v37, %v1002_v35 }
 0x20b   : > { %v566_v40 = vpop.f32.mrb[0].mxu0 }
 0x20c   : > { %v989_v41 = vadd.f32 %v988_v38, %v987_v36  ;;  %v1005_v42 = vrot.slane %v1004_v39, 1  ;;  %v582_v43 = vsel %vm581_vm3, %v566_v40, 0.0  ;;  %v595_v44 = vmul.f32 %v566_v40, %v566_v40  ;;  %v568_v45 = vpop.f32.mrb[1].mxu0 }
 0x20d   : > { %v569_v46 = vpop.f32.mrb[2].mxu0 }
 0x20e   : > { %1040 = vrot.lane.b32.xlu1 %v989_v41, %s1318_s20  ;;  %v599_v47 = vsel %vm581_vm3, %v595_v44, 0.0  ;;  %v583_v49 = vsel %vm581_vm3, %v569_v46, 0.0  ;;  %v596_v50 = vmul.f32 %v569_v46, %v569_v46  ;;  %v571_v51 = vpop.f32.mrb[3].mxu0  ;;  %v612_v53 = vpack.c.bf16 %v569_v46, %v566_v40 }
 0x20f   : > { %v584_v52 = vadd.f32 %v583_v49, %v582_v43  ;;  %v1006_v54 = vadd.f32 %v1005_v42, %v1004_v39 }
 0x210   : > { %v600_v55 = vsel %vm581_vm3, %v596_v50, 0.0 }
 0x211   : > { %v601_v56 = vadd.f32 %v600_v55, %v599_v47 }
 0x212   : > { %1046 = vrot.lane.b32.xlu1 %v1006_v54, %s1318_s20 }
 0x213   : > { %v574_v57 = vpop.f32.mrb[4].mxu0 }
 0x214   : > { %v585_v58 = vsel %vm581_vm3, %v574_v57, 0.0  ;;  %v597_v59 = vmul.f32 %v574_v57, %v574_v57  ;;  %v576_v60 = vpop.f32.mrb[5].mxu0 }
 0x215   : > { %v586_v48 = vadd.f32 %v585_v58, %v584_v52  ;;  %v577_v61 = vpop.f32.mrb[6].mxu0 }
 0x216   : > { %v602_v24 = vsel %vm581_vm3, %v597_v59, 0.0  ;;  %v587_v27 = vsel %vm581_vm3, %v577_v61, 0.0  ;;  %v598_v28 = vmul.f32 %v577_v61, %v577_v61  ;;  %v613_v62 = vpack.c.bf16 %v577_v61, %v574_v57  ;;  %v579_v63 = vpop.f32.mrb[7].mxu0 }
 0x217   : > { %v603_v0 = vadd.f32 %v602_v24, %v601_v56  ;;  %v588_v1 = vadd.f32 %v587_v27, %v586_v48 }
 0x218   : > { %v604_v2 = vsel %vm581_vm3, %v598_v28, 0.0 }
 0x219   : > { %v605_v3 = vadd.f32 %v604_v2, %v603_v0  ;;  %v589_v4 = vrot.slane %v588_v1, 4 }
 0x21b   : > { %v590_v9 = vadd.f32 %v589_v4, %v588_v1  ;;  %v606_v10 = vrot.slane %v605_v3, 4 }
 0x21d   : > { %v591_v11 = vrot.slane %v590_v9, 2  ;;  %v607_v12 = vadd.f32 %v606_v10, %v605_v3 }
 0x21f   : > { %v592_v17 = vadd.f32 %v591_v11, %v590_v9  ;;  %v608_v18 = vrot.slane %v607_v12, 2 }
 0x221   : > { %v593_v19 = vrot.slane %v592_v17, 1  ;;  %v609_v20 = vadd.f32 %v608_v18, %v607_v12 }
 0x223   : > { %v594_v21 = vadd.f32 %v593_v19, %v592_v17  ;;  %v610_v22 = vrot.slane %v609_v20, 1 }
 0x225   : > { %v611_v26 = vadd.f32 %v610_v22, %v609_v20 }
 0x26b   : > { %v1012_v5 = vpop.permute.xlu1 %1011 }
 0x26c   : > { %v1017_v6 = vsel %vm581_vm3, %v612_v53, %v1012_v5 }
 0x26d   : > { %v1242_v7 = vcombine.low %v1017_v6, %v1017_v6  ;;  %v1243_v8 = vcombine.high %v1017_v6, %v1017_v6 }
 0x26f   : > { %1035 = vst [vmem:[%s208_s24] sm:$0xf] %v1242_v7  ;;  %1036 = vst [vmem:[%s208_s24 + $0x4] sm:$0xf] %v1243_v8 }
 0x273   : > { %v1014_v13 = vpop.permute.xlu1 %1013 }
 0x274   : > { %v1020_v14 = vsel %vm581_vm3, %v613_v62, %v1014_v13 }
 0x275   : > { %v1244_v15 = vcombine.low %v1020_v14, %v1020_v14  ;;  %v1245_v16 = vcombine.high %v1020_v14, %v1020_v14 }
 0x277   : > { %1037 = vst [vmem:[%s208_s24 + $0x8] sm:$0xf] %v1244_v15  ;;  %1038 = vst [vmem:[%s208_s24 + $0xc] sm:$0xf] %v1245_v16 }
 0x280   : > { %v1041_v23 = vpop.permute.xlu1 %1040 }
 0x281   : > { %v1043_v25 = vsel %vm581_vm3, %v594_v21, %v1041_v23 }
 0x282   : > { %1044 = vst [vmem:[%s211_s27] sm:$0x1] %v1043_v25 }
 0x284   : > { %v1047_v29 = vpop.permute.xlu1 %1046 }
 0x285   : > { %v1049_v30 = vsel %vm581_vm3, %v611_v26, %v1047_v29 }
 0x286   : > { %1050 = vst [vmem:[%s214_s30] sm:$0x1] %v1049_v30 }
 0x287 PF: > { %s15_s15 = sadd.s32 1, %s1312_s15  }
 0x288   : > { %p12_p4 = scmp.ge.s32.totalorder %s15_s15, 10  }
 0x28a   :  { %14 = sbr.rel (!%p12_p4) target bundleno = 1 (0x1), region = 85 }

// kernel: res1_forward.3
= control target key start
LH: loop header
LB: loop body
LE: loop exit
PB: predicated region body
PF: predicated region fallthrough
CT: control target
= control target key end

     0   :  { %10 = vsyncpa [#allocation3], 0  ;;  %s2172_s0 = inlined_call_operand.vmem [shape: bf16[1,128], index: 0, kind: input, shape index: {}]   ;;  %s2173_s1 = inlined_call_operand.vmem [shape: bf16[1,128], index: 1, kind: input, shape index: {}]   ;;  %s2174_s2 = inlined_call_operand.vmem [shape: bf16[2,4,8,4,128], index: 2, kind: input, shape index: {}, may-alias: {2,3,4}]   ;;  %s2175_s3 = inlined_call_operand.vmem [shape: bf16[2,4,8,4,128], index: 3, kind: input, shape index: {}, may-alias: {2,3,4}]   ;;  %s2176_s4 = inlined_call_operand.vmem [shape: bf16[2,4,8,4,128], index: 4, kind: input, shape index: {}, may-alias: {2,3,4}]   ;;  %s2177_s5 = inlined_call_operand.hbm [shape: f32[2,4,4,4,64], index: 5, kind: output, shape index: {}]  }
   0x1   :  { %12 = vsyncpa [#allocation3 + $0x1], 0  ;;  %s1519_s18 = smov 0   ;;  %s1521_s19 = smov 0  }
   0x2   :  { %s1523_s20 = smov 0   ;;  %s1525_s21 = smov 0  }
   0x3   :  { %s1527_s22 = smov 0   ;;  %s1529_s23 = smov 0  }
   0x4   :  { %s1531_s24 = smov 0   ;;  %s1533_s25 = smov 0  }
   0x5 LB: > { %s1279_s26 = sadd.s32 4294967295, %s1482_s25   ;;  %s1280_s27 = sadd.s32 4294967294, %s1482_s25   ;;  %s1482_s25 = sphi %s1533_s25, %s18_s25   ;;  %s1478_s24 = sphi %s1531_s24, %s2189_s24   ;;  %s1474_s23 = sphi %s1529_s23, %s2188_s23   ;;  %s1470_s22 = sphi %s1527_s22, %s2187_s22   ;;  %s1466_s21 = sphi %s1525_s21, %s2186_s21   ;;  %s1462_s20 = sphi %s1523_s20, %s2185_s20   ;;  %s1458_s19 = sphi %s1521_s19, %s2184_s19   ;;  %s1454_s18 = sphi %s1519_s18, %s2183_s18  }
   0x6   : > { %s27_s28 = sadd.s32 1, %s1474_s23  ;;  %s30_s29 = sadd.s32 1, %s1478_s24 }
   0x7   : > { %p28_p0 = scmp.ge.s32.totalorder %s27_s28, 4  ;;  %p187_p1 = scmp.ne.s32.totalorder %s1462_s20, %s1458_s19 }
   0x8   : > { %p188_p2 = scmp.eq.s32.totalorder %s1279_s26, 7  ;;  %p193_p5 = scmp.ne.s32.totalorder %s1458_s19, %s1454_s18 }
   0x9   : > { %s2191_s28 = smov (%p28_p0, %s27_s28), 0  ;;  %s2193_s29 = smov (!%p28_p0, %s30_s29), %s1478_s24 }
   0xa   : > { %s173_s30 = ssub.s32 %s1474_s23, %s2191_s28  ;;  %p1570_p3 = por %p188_p2, %p187_p1 }
   0xb   : > { %p32_p4 = scmp.ge.s32.totalorder %s2193_s29, 2  ;;  %p194_p6 = scmp.eq.s32.totalorder %s1280_s27, 7 }
   0xc   : > { %p1285_p7 = scmp.ge.s32.totalorder %s1482_s25, 1  ;;  %p266_p9 = scmp.lt.s32.totalorder %s1482_s25, 9 }
   0xd   : > { %s2195_s29 = smov (%p32_p4, %s2193_s29), 0  ;;  %p1579_p8 = por %p194_p6, %p193_p5 }
   0xe   : > { %s172_s8 = ssub.s32 %s1478_s24, %s2195_s29  ;;  %s177_s9 = sadd.s32 1, %s1462_s20 }
   0xf   : > { %s174_s10 = sor.u32 %s173_s30, %s172_s8  ;;  %p267_p10 = pnand %p1285_p7, %p266_p9 }
  0x10   : > { %p175_p11 = scmp.eq.s32.totalorder %s174_s10, 0  ;;  %p325_p12 = scmp.lt.s32.totalorder (!%p267_p10), %s1470_s22, 1  ;;  %v362_v0 = vld [vmem:[%s2172_s0] sm:$0x1] (!%p267_p10)  ;;  %v375_v1 = vlaneseq (!%p267_p10)  ;;  %v1484_v5 = vmov (!%p267_p10), 1983009808  }
  0x11   : > { %270 = sbr.rel (%p267_p10) target bundleno = 277 (0x115), region = 40  ;;  %p339_p13 = scmp.lt.s32.totalorder (!%p267_p10), %s1466_s21, 3  ;;  %v363_v2 = vld [vmem:[%s2173_s1] sm:$0x1] (!%p267_p10)  ;;  %v373_v3 = vpack.i.b16 (!%p267_p10), %v362_v0, %v362_v0  ;;  %v419_v6 = vunpack.c.l.s4 (!%p267_p10), %v1484_v5  ;;  %v1485_v33 = vmov (!%p267_p10), 0   ;;  %vm554_vm0 = vcmask (!%p267_p10), 1040384  }
  0x12   : > { %s1588_s11 = scalar_select %p175_p11, %s1462_s20, %s177_s9  }
  0x13   : > { %s1599_s16 = sadd.s32 (!%p267_p10), 4294967295, %s1466_s21  ;;  %v376_v4 = vshrl.u32 (!%p267_p10), %v375_v1, 7  ;;  %v388_v8 = vpack.i.b16 (!%p267_p10), %v363_v2, %v363_v2  ;;  %s346_s9 = sadd.s32 (!%p267_p10), 1, %s1466_s21  ;;  %v420_v10 = vunpack.c.0.s8 (!%p267_p10), %v419_v6  ;;  %vm555_vm1 = vsmask.f32 (!%p267_p10), 256 }
  0x14   : > { %p323_p0 = scmp.gt.s32.totalorder (!%p267_p10), %s1599_s16, 0  ;;  %p1288_p1 = scmp.lt.s32.totalorder (!%p267_p10), %s1599_s16, 3  ;;  %vm1932_vm2 = vmand (!%p267_p10), %vm554_vm0, %vm555_vm1  ;;  %vm1131_vm3 = vcmask (!%p267_p10), 519168  }
  0x15   : > { %v377_v7 = vsub.s32 (!%p267_p10), 0, %v376_v4  ;;  %p1620_p2 = scmp.lt.s32.totalorder (!%p267_p10), %s346_s9, 3  ;;  %v1630_v20 = vsub.s32 (!%p267_p10), %v420_v10, %v376_v4  ;;  %p845_p4 = scmp.gt.s32.totalorder (!%p267_p10), %s1466_s21, 0 }
  0x17   : > { %v1609_v9 = vrot.slane (!%p267_p10), %v373_v3, %v377_v7  ;;  %v1616_v11 = vrot.slane (!%p267_p10), %v388_v8, %v377_v7 }
  0x18   : > { %s326_s17 = scalar_select %p325_p12, %s1470_s22, 1 }
  0x19   : > { %s340_s26 = scalar_select %p339_p13, %s1466_s21, 3 }
  0x1a   : > { %s1605_s27 = sshll.u32 %s326_s17, 5  ;;  %s2199_s9 = smov (!%p1620_p2, %s346_s9), 3 }
  0x1b   : > { %s1296_s30 = sshll.u32 %s340_s26, 3  ;;  %s2201_s9 = smov (!%p1620_p2, %s2199_s9), 3 }
  0x1c   : > { %s343_s8 = sadd.s32 %s1296_s30, %s1605_s27  ;;  %s1486_s30 = smov 64  }
  0x1d   : > { %s1298_s10 = sshll.u32 %s343_s8, 1 }
  0x1e   : > { %s345_s14 = scalar_lea.vmem %s2175_s3, %s1298_s10 }
  0x1f   : > { %v365_v12 = vld [vmem:[%s345_s14 + $0x2] sm:$0x3]  ;;  %v364_v13 = vld [vmem:[%s345_s14] sm:$0x3]  ;;  %v366_v14 = vld [vmem:[%s345_s14 + $0x4] sm:$0x3] }
  0x20   : > { %v380_v15 = vmul.bf16 %v1609_v9, %v365_v12  ;;  %v379_v16 = vmul.bf16 %v1609_v9, %v364_v13  ;;  %v381_v17 = vmul.bf16 %v1609_v9, %v366_v14  ;;  %s324_s17 = scalar_select %p323_p0, %s1599_s16, 0  ;;  %v367_v18 = vld [vmem:[%s345_s14 + $0x6] sm:$0x3]  ;;  %v368_v19 = vld [vmem:[%s345_s14 + $0x8] sm:$0x3] }
  0x21   : > { %v382_v21 = vmul.bf16 %v1609_v9, %v367_v18  ;;  %v383_v22 = vmul.bf16 %v1609_v9, %v368_v19  ;;  %v369_v23 = vld [vmem:[%s345_s14 + $0xa] sm:$0x3]  ;;  %v370_v24 = vld [vmem:[%s345_s14 + $0xc] sm:$0x3]  ;;  %v371_v29 = vld [vmem:[%s345_s14 + $0xe] sm:$0x3] }
  0x22   : > { %v395_v25 = vadd.bf16 %v1616_v11, %v380_v15  ;;  %v394_v26 = vadd.bf16 %v1616_v11, %v379_v16  ;;  %v396_v27 = vadd.bf16 %v1616_v11, %v381_v17  ;;  %s2197_s17 = smov (!%p1288_p1, %s324_s17), 3  ;;  %v384_v28 = vmul.bf16 %v1609_v9, %v369_v23  ;;  %s1302_s14 = sshll.u32 %s2201_s9, 3 }
  0x23   : > { %v397_v30 = vadd.bf16 %v1616_v11, %v382_v21  ;;  %v398_v31 = vadd.bf16 %v1616_v11, %v383_v22  ;;  %v385_v32 = vmul.bf16 %v1609_v9, %v370_v24  ;;  %s1293_s16 = sshll.u32 %s2197_s17, 3  ;;  %v386_v41 = vmul.bf16 %v1609_v9, %v371_v29  ;;  %s355_s15 = sadd.s32 %s1302_s14, %s1605_s27 }
  0x24   : > { %v1650_v34 = vmax.bf16 %v1485_v33, %v395_v25  ;;  %v1653_v35 = vmax.bf16 %v1485_v33, %v394_v26  ;;  %v1656_v36 = vmax.bf16 %v1485_v33, %v396_v27  ;;  %v399_v37 = vadd.bf16 %v1616_v11, %v384_v28  ;;  %s331_s26 = sadd.s32 %s1605_s27, %s1293_s16  ;;  %s1304_s9 = sshll.u32 %s355_s15, 1 }
  0x25   : > { %v1661_v38 = vmax.bf16 %v1485_v33, %v397_v30  ;;  %v1664_v39 = vmax.bf16 %v1485_v33, %v398_v31  ;;  %v400_v40 = vadd.bf16 %v1616_v11, %v385_v32  ;;  %s1295_s8 = sshll.u32 %s331_s26, 1  ;;  %v401_v55 = vadd.bf16 %v1616_v11, %v386_v41  ;;  %s1735_s16 = scalar_lea.vmem %s2176_s4, %s1304_s9 }
  0x26   : > { %567 = vrot.lane.b32.xlu1 %v1650_v34, %s1486_s30  ;;  %565 = vrot.lane.b32.xlu0 %v1653_v35, %s1486_s30  ;;  %v424_v42 = vrot.slane %v1653_v35, %v1630_v20  ;;  %v438_v43 = vrot.slane %v1656_v36, %v1630_v20  ;;  %v431_v44 = vrot.slane %v1650_v34, %v1630_v20  ;;  %s1681_s13 = scalar_lea.vmem %s2174_s2, %s1295_s8 }
  0x27   : > { %v445_v45 = vrot.slane %v1661_v38, %v1630_v20  ;;  %v452_v46 = vrot.slane %v1664_v39, %v1630_v20  ;;  %v613_v47 = vld [vmem:[%s1681_s13] sm:$0x3]  ;;  %v1689_v51 = vmax.bf16 %v1485_v33, %v399_v37  ;;  %v1693_v54 = vmax.bf16 %v1485_v33, %v400_v40  ;;  %v614_v15 = vld [vmem:[%s1681_s13 + $0x2] sm:$0x3]  ;;  %v615_v22 = vld [vmem:[%s1681_s13 + $0x4] sm:$0x3] }
  0x28   : > { %v475_v48 = vshrl.u32 %v424_v42, 16  ;;  %v478_v49 = vshll.u32 %v424_v42, 16  ;;  %v489_v50 = vshrl.u32 %v438_v43, 16  ;;  %v621_v52 = vmul.bf16 %v613_v47, %v1609_v9  ;;  %v616_v27 = vld [vmem:[%s1681_s13 + $0x6] sm:$0x3] }
  0x29   : > { %v482_v53 = vshrl.u32 %v431_v44, 16  ;;  %v492_v57 = vshll.u32 %v438_v43, 16  ;;  %v485_v58 = vshll.u32 %v431_v44, 16  ;;  %v503_v59 = vshrl.u32 %v452_v46, 16  ;;  %v618_v28 = vld [vmem:[%s1681_s13 + $0xa] sm:$0x3] }
  0x2a   : > { %569 = vrot.lane.b32.xlu0 %v1656_v36, %s1486_s30  ;;  %v477_v56 = vrot.slane %v475_v48, 7  ;;  %v629_v60 = vadd.bf16 %v621_v52, %v1616_v11  ;;  %v491_v61 = vrot.slane %v489_v50, 7  ;;  %v496_v63 = vshrl.u32 %v445_v45, 16  ;;  %v617_v42 = vld [vmem:[%s1681_s13 + $0x8] sm:$0x3] }
  0x2b   : > { %v484_v62 = vrot.slane %v482_v53, 7  ;;  %v459_v1 = vrot.slane %v1689_v51, %v1630_v20  ;;  %v499_v3 = vshll.u32 %v445_v45, 16  ;;  %v466_v4 = vrot.slane %v1693_v54, %v1630_v20  ;;  %v619_v44 = vld [vmem:[%s1681_s13 + $0xc] sm:$0x3]  ;;  %v620_v45 = vld [vmem:[%s1681_s13 + $0xe] sm:$0x3] }
  0x2c   : > { %v480_v0 = vor.u32 %v478_v49, %v477_v56  ;;  %v1705_v2 = vmax.bf16 %v1485_v33, %v629_v60  ;;  %v505_v6 = vrot.slane %v503_v59, 7  ;;  %v506_v7 = vshll.u32 %v452_v46, 16  ;;  %v866_v52 = vld [vmem:[%s1735_s16] sm:$0x3]  ;;  %s846_s26 = scalar_select %p845_p4, 1, 0 }
  0x2d   : > { %v487_v5 = vor.u32 %v485_v58, %v484_v62  ;;  %v1711_v8 = vmax.bf16 %v1485_v33, %v401_v55  ;;  %v494_v10 = vor.u32 %v492_v57, %v491_v61  ;;  %v498_v12 = vrot.slane %v496_v63, 7  ;;  %v867_v57 = vld [vmem:[%s1735_s16 + $0x2] sm:$0x3]  ;;  %v868_v58 = vld [vmem:[%s1735_s16 + $0x4] sm:$0x3] }
  0x2e   : > { %530 = vrot.lane.b32.xlu0 %v480_v0, %s1486_s30  ;;  %797 = vrot.lane.b32.xlu1 %v1705_v2, %s1486_s30  ;;  %v510_v13 = vshrl.u32 %v459_v1, 16  ;;  %v517_v14 = vshrl.u32 %v466_v4, 16  ;;  %v508_v17 = vor.u32 %v506_v7, %v505_v6  ;;  %v520_v19 = vshll.u32 %v466_v4, 16  ;;  %v869_v4 = vld [vmem:[%s1735_s16 + $0x6] sm:$0x3]  ;;  %s847_s8 = scvt.s32.f32 %s846_s26 }
  0x2f   : > { %v473_v16 = vrot.slane %v1711_v8, %v1630_v20  ;;  %v622_v21 = vmul.bf16 %v614_v15, %v1609_v9  ;;  %v501_v23 = vor.u32 %v499_v3, %v498_v12  ;;  %v513_v25 = vshll.u32 %v459_v1, 16  ;;  %v871_v6 = vld [vmem:[%s1735_s16 + $0xa] sm:$0x3] }
  0x30   : > { %v519_v18 = vrot.slane %v517_v14, 7  ;;  %v512_v24 = vrot.slane %v510_v13, 7  ;;  %v623_v31 = vmul.bf16 %v615_v22, %v1609_v9  ;;  %v624_v32 = vmul.bf16 %v616_v27, %v1609_v9  ;;  %v872_v13 = vld [vmem:[%s1735_s16 + $0xc] sm:$0x3]  ;;  %s850_s10 = sshrl.u32 %s847_s8, 16  ;;  %p849_p5 = scmp.ne.f32.partialorder %s847_s8, %s847_s8 }
  0x31   : > { %v524_v26 = vshrl.u32 %v473_v16, 16  ;;  %v630_v30 = vadd.bf16 %v622_v21, %v1616_v11  ;;  %v527_v41 = vshll.u32 %v473_v16, 16  ;;  %v626_v43 = vmul.bf16 %v618_v28, %v1609_v9  ;;  %s851_s12 = sand.u32 1, %s850_s10 }
  0x32   : > { %532 = vrot.lane.b32.xlu0 %v487_v5, %s1486_s30  ;;  %534 = vrot.lane.b32.xlu1 %v494_v10, %s1486_s30  ;;  %v522_v29 = vor.u32 %v520_v19, %v519_v18  ;;  %v515_v37 = vor.u32 %v513_v25, %v512_v24  ;;  %v631_v47 = vadd.bf16 %v623_v31, %v1616_v11  ;;  %v870_v5 = vld [vmem:[%s1735_s16 + $0x8] sm:$0x3]  ;;  %s852_s13 = sadd.s32 32767, %s851_s12 }
  0x33   : > { %v526_v40 = vrot.slane %v524_v26, 7  ;;  %v1741_v46 = vmax.bf16 %v1485_v33, %v630_v30  ;;  %v632_v48 = vadd.bf16 %v624_v32, %v1616_v11  ;;  %v625_v50 = vmul.bf16 %v617_v42, %v1609_v9  ;;  %s853_s14 = sadd.s32 %s852_s13, %s847_s8 }
  0x34   : > { %v634_v53 = vadd.bf16 %v626_v43, %v1616_v11  ;;  %v627_v55 = vmul.bf16 %v619_v44, %v1609_v9  ;;  %v628_v56 = vmul.bf16 %v620_v45, %v1609_v9  ;;  %v1758_v60 = vmax.bf16 %v1485_v33, %v631_v47  ;;  %s854_s15 = sand.u32 4294901760, %s853_s14 }
  0x35   : > { %v529_v49 = vor.u32 %v527_v41, %v526_v40  ;;  %v666_v59 = vrot.slane %v1741_v46, %v1630_v20  ;;  %v1761_v61 = vmax.bf16 %v1485_v33, %v632_v48  ;;  %v874_v62 = vmul.bf16 %v866_v52, %v1609_v9  ;;  %s2203_s15 = smov (%p849_p5, %s854_s15), 2143289344 }
  0x36   : > { %538 = vrot.lane.b32.xlu0 %v508_v17, %s1486_s30  ;;  %536 = vrot.lane.b32.xlu1 %v501_v23, %s1486_s30  ;;  %v633_v63 = vadd.bf16 %v625_v50, %v1616_v11  ;;  %v659_v0 = vrot.slane %v1705_v2, %v1630_v20  ;;  %v875_v1 = vmul.bf16 %v867_v57, %v1609_v9  ;;  %v873_v23 = vld [vmem:[%s1735_s16 + $0xe] sm:$0x3]  ;;  %s857_s9 = sshrl.u32 %s2203_s15, 16 }
  0x37   : > { %v876_v3 = vmul.bf16 %v868_v58, %v1609_v9  ;;  %v1774_v7 = vmax.bf16 %v1485_v33, %v634_v53  ;;  %v635_v10 = vadd.bf16 %v627_v55, %v1616_v11  ;;  %v636_v12 = vadd.bf16 %v628_v56, %v1616_v11  ;;  %s858_s27 = sshll.u32 %s857_s9, 16 }
  0x38   : > { %v717_v14 = vshrl.u32 %v666_v59, 16  ;;  %v1780_v15 = vadd.bf16 %v874_v62, %v1616_v11  ;;  %v1783_v16 = vadd.bf16 %v875_v1, %v1616_v11  ;;  %v680_v18 = vrot.slane %v1761_v61, %v1630_v20  ;;  %s859_s17 = sor.u32 %s858_s27, %s857_s9 }
  0x39   : > { %v1786_v17 = vadd.bf16 %v876_v3, %v1616_v11  ;;  %v877_v19 = vmul.bf16 %v869_v4, %v1609_v9  ;;  %v878_v21 = vmul.bf16 %v870_v5, %v1609_v9  ;;  %v879_v22 = vmul.bf16 %v871_v6, %v1609_v9  ;;  %s1099_s16 = scalar_select %p339_p13, 1, 0 }
  0x3a   : > { %542 = vrot.lane.b32.xlu0 %v522_v29, %s1486_s30  ;;  %540 = vrot.lane.b32.xlu1 %v515_v37, %s1486_s30  ;;  %v1799_v24 = vmax.bf16 %v1485_v33, %v633_v63  ;;  %v710_v25 = vshrl.u32 %v659_v0, 16  ;;  %v673_v26 = vrot.slane %v1758_v60, %v1630_v20  ;;  %v880_v27 = vmul.bf16 %v872_v13, %v1609_v9 }
  0x3b   : > { %v713_v28 = vshll.u32 %v659_v0, 16  ;;  %v1805_v29 = vadd.bf16 %v877_v19, %v1616_v11  ;;  %v1808_v30 = vadd.bf16 %v878_v21, %v1616_v11  ;;  %v1811_v31 = vadd.bf16 %v879_v22, %v1616_v11  ;;  %s1993_s26 = scvt.s32.f32 %s1099_s16 }
  0x3c   : > { %v719_v32 = vrot.slane %v717_v14, 7  ;;  %v720_v37 = vshll.u32 %v666_v59, 16  ;;  %v1814_v40 = vadd.bf16 %v880_v27, %v1616_v11  ;;  %v881_v41 = vmul.bf16 %v873_v23, %v1609_v9 }
  0x3d   : > { %v1820_v42 = vmax.bf16 %v1485_v33, %v635_v10  ;;  %v1823_v43 = vmax.bf16 %v1485_v33, %v636_v12  ;;  %v731_v44 = vshrl.u32 %v680_v18, 16  ;;  %v694_v45 = vrot.slane %v1774_v7, %v1630_v20  ;;  %s1103_s8 = sshrl.u32 %s1993_s26, 16  ;;  %p1102_p6 = scmp.ne.f32.partialorder %s1993_s26, %s1993_s26 }
  0x3e   : > { %799 = vrot.lane.b32.xlu0 %v1741_v46, %s1486_s30  ;;  %544 = vrot.lane.b32.xlu1 %v529_v49, %s1486_s30  ;;  %v712_v47 = vrot.slane %v710_v25, 7  ;;  %v724_v48 = vshrl.u32 %v673_v26, 16  ;;  %v687_v9 = vrot.slane %v1799_v24, %v1630_v20  ;;  %v1832_v49 = vadd.bf16 %v881_v41, %v1616_v11  ;;  %s1104_s10 = sand.u32 1, %s1103_s8  ;;  %s1306_s8 = sshll.u32 %s1466_s21, 2 }
  0x3f   : > { %v722_v50 = vor.u32 %v720_v37, %v719_v32  ;;  %v727_v52 = vshll.u32 %v673_v26, 16  ;;  %v733_v53 = vrot.slane %v731_v44, 7  ;;  %v734_v55 = vshll.u32 %v680_v18, 16  ;;  %s1105_s12 = sadd.s32 32767, %s1104_s10  ;;  %s1307_s10 = sshll.u32 %s1470_s22, 4 }
  0x40   : > { %v745_v56 = vshrl.u32 %v694_v45, 16  ;;  %v708_v57 = vrot.slane %v1823_v43, %v1630_v20  ;;  %v715_v58 = vor.u32 %v713_v28, %v712_v47  ;;  %v726_v59 = vrot.slane %v724_v48, 7  ;;  %s1106_s13 = sadd.s32 %s1105_s12, %s1993_s26  ;;  %s1149_s12 = sadd.s32 %s1307_s10, %s1306_s8 }
  0x41   : > { %v738_v62 = vshrl.u32 %v687_v9, 16  ;;  %v701_v11 = vrot.slane %v1820_v42, %v1630_v20  ;;  %v736_v63 = vor.u32 %v734_v55, %v733_v53  ;;  %v748_v1 = vshll.u32 %v694_v45, 16  ;;  %s1107_s14 = sand.u32 4294901760, %s1106_s13  ;;  %s1308_s21 = sshll.u32 %s1149_s12, 6 }
  0x42   : > { %803 = vrot.lane.b32.xlu0 %v1761_v61, %s1486_s30  ;;  %801 = vrot.lane.b32.xlu1 %v1758_v60, %s1486_s30  ;;  %v747_v0 = vrot.slane %v745_v56, 7  ;;  %v759_v3 = vshrl.u32 %v708_v57, 16  ;;  %v729_v4 = vor.u32 %v727_v52, %v726_v59  ;;  %v741_v6 = vshll.u32 %v687_v9, 16  ;;  %s2205_s14 = smov (%p1102_p6, %s1107_s14), 2143289344 }
  0x43   : > { %v740_v5 = vrot.slane %v738_v62, 7  ;;  %v752_v10 = vshrl.u32 %v701_v11, 16  ;;  %v762_v14 = vshll.u32 %v708_v57, 16  ;;  %v755_v21 = vshll.u32 %v701_v11, 16  ;;  %s1110_s15 = sshrl.u32 %s2205_s14, 16 }
  0x44   : > { %v750_v12 = vor.u32 %v748_v1, %v747_v0  ;;  %v761_v13 = vrot.slane %v759_v3, 7  ;;  %v1858_v25 = vmax.bf16 %v1485_v33, %v1780_v15  ;;  %v1866_v26 = vmax.bf16 %v1485_v33, %v1786_v17  ;;  %s1111_s9 = sshll.u32 %s1110_s15, 16 }
  0x45   : > { %v743_v18 = vor.u32 %v741_v6, %v740_v5  ;;  %v754_v19 = vrot.slane %v752_v10, 7  ;;  %v1874_v15 = vmax.bf16 %v1485_v33, %v1783_v16  ;;  %v1880_v28 = vmax.bf16 %v1485_v33, %v1808_v30  ;;  %s1112_s27 = sor.u32 %s1111_s9, %s1110_s15  ;;  %s2111_s15 = scalar_lea.hbm %s2177_s5, %s1308_s21 }
  0x46   : > { %807 = vrot.lane.b32.xlu0 %v1774_v7, %s1486_s30  ;;  %805 = vrot.lane.b32.xlu1 %v1799_v24, %s1486_s30  ;;  %v764_v22 = vor.u32 %v762_v14, %v761_v13  ;;  %v912_v27 = vrot.slane %v1858_v25, %v1630_v20  ;;  %v926_v17 = vrot.slane %v1866_v26, %v1630_v20 }
  0x47   : > { %v757_v23 = vor.u32 %v755_v21, %v754_v19  ;;  %v1888_v37 = vmax.bf16 %v1485_v33, %v1805_v29  ;;  %v919_v16 = vrot.slane %v1874_v15, %v1630_v20  ;;  %v1894_v41 = vmax.bf16 %v1485_v33, %v1814_v40 }
  0x48   : > { %v963_v32 = vshrl.u32 %v912_v27, 16  ;;  %v966_v44 = vshll.u32 %v912_v27, 16  ;;  %v977_v45 = vshrl.u32 %v926_v17, 16  ;;  %v940_v47 = vrot.slane %v1880_v28, %v1630_v20 }
  0x49   : > { %v1904_v29 = vmax.bf16 %v1485_v33, %v1811_v31  ;;  %v970_v48 = vshrl.u32 %v919_v16, 16  ;;  %v933_v40 = vrot.slane %v1888_v37, %v1630_v20  ;;  %v973_v9 = vshll.u32 %v919_v16, 16 }
  0x4a   : > { %811 = vrot.lane.b32.xlu0 %v1823_v43, %s1486_s30  ;;  %809 = vrot.lane.b32.xlu1 %v1820_v42, %s1486_s30  ;;  %v965_v30 = vrot.slane %v963_v32, 7  ;;  %v979_v53 = vrot.slane %v977_v45, 7  ;;  %v991_v55 = vshrl.u32 %v940_v47, 16  ;;  %v954_v56 = vrot.slane %v1894_v41, %v1630_v20 }
  0x4b   : > { %v1916_v31 = vmax.bf16 %v1485_v33, %v1832_v49  ;;  %v972_v57 = vrot.slane %v970_v48, 7  ;;  %v947_v59 = vrot.slane %v1904_v29, %v1630_v20  ;;  %v987_v62 = vshll.u32 %v933_v40, 16 }
  0x4c   : > { %v968_v52 = vor.u32 %v966_v44, %v965_v30  ;;  %v994_v0 = vshll.u32 %v940_v47, 16  ;;  %v1005_v1 = vshrl.u32 %v954_v56, 16 }
  0x4d   : > { %v975_v3 = vor.u32 %v973_v9, %v972_v57  ;;  %v998_v5 = vshrl.u32 %v947_v59, 16  ;;  %v961_v49 = vrot.slane %v1916_v31, %v1630_v20 }
  0x4e   : > { %767 = vrot.lane.b32.xlu0 %v722_v50, %s1486_s30  ;;  %765 = vrot.lane.b32.xlu1 %v715_v58, %s1486_s30  ;;  %v980_v50 = vshll.u32 %v926_v17, 16  ;;  %v984_v58 = vshrl.u32 %v933_v40, 16  ;;  %v1007_v10 = vrot.slane %v1005_v1, 7 }
  0x4f   : > { %v1000_v14 = vrot.slane %v998_v5, 7  ;;  %v1012_v19 = vshrl.u32 %v961_v49, 16  ;;  %v1015_v20 = vshll.u32 %v961_v49, 16 }
  0x50   : > { %v982_v11 = vor.u32 %v980_v50, %v979_v53 }
  0x52   : > { %771 = vrot.lane.b32.xlu0 %v736_v63, %s1486_s30  ;;  %769 = vrot.lane.b32.xlu1 %v729_v4, %s1486_s30  ;;  %v993_v63 = vrot.slane %v991_v55, 7  ;;  %v986_v4 = vrot.slane %v984_v58, 7 }
  0x54   : > { %v996_v6 = vor.u32 %v994_v0, %v993_v63  ;;  %v989_v13 = vor.u32 %v987_v62, %v986_v4 }
  0x56   : > { %775 = vrot.lane.b32.xlu0 %v750_v12, %s1486_s30  ;;  %773 = vrot.lane.b32.xlu1 %v743_v18, %s1486_s30  ;;  %v1008_v12 = vshll.u32 %v954_v56, 16  ;;  %v1001_v18 = vshll.u32 %v947_v59, 16 }
  0x58   : > { %v1010_v21 = vor.u32 %v1008_v12, %v1007_v10 }
  0x5a   : > { %779 = vrot.lane.b32.xlu0 %v764_v22, %s1486_s30  ;;  %777 = vrot.lane.b32.xlu1 %v757_v23, %s1486_s30  ;;  %v1003_v22 = vor.u32 %v1001_v18, %v1000_v14  ;;  %v1014_v23 = vrot.slane %v1012_v19, 7 }
  0x5c   : > { %v1017_v27 = vor.u32 %v1015_v20, %v1014_v23  ;;  %v1976_v20 = vstv %s859_s17  ;;  %s319_s17 = sand.u32 1, %s1458_s19  }
  0x5d   : > { %s1286_s16 = sshll.u32 %s319_s17, 4  ;;  %s2118_s9 = scalar_lea.sflag [#allocation3], %s319_s17 }
  0x5e   : > { %573 = vrot.lane.b32.xlu0 %v1664_v39, %s1486_s30  ;;  %571 = vrot.lane.b32.xlu1 %v1661_v38, %s1486_s30  ;;  %s321_s26 = scalar_lea.vmem [#allocation2], %s1286_s16  ;;  %s1487_s16 = smov [#allocation2]  }
  0x5f   : > { %s1152_s22 = sshll.u32 %s321_s26, 4  ;;  %s1392_s8 = sshll.u32 %s1487_s16, 4  ;;  %s2113_s22 = int_to_ptr.vmem [resolvable:$true] %s1152_s22  ;;  %s1393_s8 = int_to_ptr.vmem [resolvable:$false] %s1392_s8 }
  0x60   : > { %s1394_s10 = scalar_lea.vmem %s1393_s8, 512  ;;  %p1395_p11 = scmp.lt.s32.totalorder %s2113_s22, %s1393_s8 }
  0x62   : > { %577 = vrot.lane.b32.xlu0 %v1693_v54, %s1486_s30  ;;  %575 = vrot.lane.b32.xlu1 %v1689_v51, %s1486_s30 }
  0x66   : > { %1050 = vrot.lane.b32.xlu0 %v1858_v25, %s1486_s30  ;;  %579 = vrot.lane.b32.xlu1 %v1711_v8, %s1486_s30 }
  0x6a   : > { %1054 = vrot.lane.b32.xlu0 %v1866_v26, %s1486_s30  ;;  %1052 = vrot.lane.b32.xlu1 %v1874_v15, %s1486_s30 }
  0x6e   : > { %1058 = vrot.lane.b32.xlu0 %v1880_v28, %s1486_s30  ;;  %1056 = vrot.lane.b32.xlu1 %v1888_v37, %s1486_s30 }
  0x72   : > { %1062 = vrot.lane.b32.xlu0 %v1894_v41, %s1486_s30  ;;  %1060 = vrot.lane.b32.xlu1 %v1904_v29, %s1486_s30 }
  0x76   : > { %1018 = vrot.lane.b32.xlu0 %v968_v52, %s1486_s30  ;;  %1064 = vrot.lane.b32.xlu1 %v1916_v31, %s1486_s30 }
  0x7a   : > { %1022 = vrot.lane.b32.xlu0 %v982_v11, %s1486_s30  ;;  %1020 = vrot.lane.b32.xlu1 %v975_v3, %s1486_s30 }
  0x7e   : > { %1026 = vrot.lane.b32.xlu0 %v996_v6, %s1486_s30  ;;  %1024 = vrot.lane.b32.xlu1 %v989_v13, %s1486_s30 }
  0x82   : > { %1030 = vrot.lane.b32.xlu0 %v1010_v21, %s1486_s30  ;;  %1028 = vrot.lane.b32.xlu1 %v1003_v22, %s1486_s30 }
  0x86   : > { %1032 = vrot.lane.b32.xlu1 %v1017_v27, %s1486_s30 }
  0x98   : > { %v566_v32 = vpop.permute.xlu0 %565  ;;  %v568_v17 = vpop.permute.xlu1 %567 }
  0x99   : > { %v589_v44 = vmax.bf16 %v566_v32, %v1653_v35  ;;  %v590_v9 = vmax.bf16 %v568_v17, %v1650_v34 }
  0x9c   : > { %v570_v16 = vpop.permute.xlu0 %569 }
  0x9d   : > { %v591_v52 = vmax.bf16 %v570_v16, %v1656_v36 }
  0xa0   : > { %v531_v45 = vpop.permute.xlu0 %530  ;;  %v798_v47 = vpop.permute.xlu1 %797 }
  0xa1   : > { %v557_v48 = vsel %vm1932_vm2, 0, %v531_v45  ;;  %v821_v12 = vmax.bf16 %v798_v47, %v1705_v2 }
  0xa2   : > { %v597_v40 = vmax.bf16 %v589_v44, %v557_v48 }
  0xa4   : > { %v533_v50 = vpop.permute.xlu0 %532  ;;  %v535_v53 = vpop.permute.xlu1 %534 }
  0xa5   : > { %v558_v55 = vsel %vm1932_vm2, 0, %v533_v50  ;;  %v559_v56 = vsel %vm1932_vm2, 0, %v535_v53 }
  0xa6   : > { %v1946_v35 = vmax.bf16 %v590_v9, %v558_v55  ;;  %v1948_v57 = vmax.bf16 %v591_v52, %v559_v56 }
  0xa8   : > { %v605_v58 = vmax.bf16 %v1946_v35, %v597_v40  ;;  %v539_v59 = vpop.permute.xlu0 %538  ;;  %v537_v62 = vpop.permute.xlu1 %536 }
  0xa9   : > { %v560_v52 = vsel %vm1932_vm2, 0, %v537_v62  ;;  %v561_v56 = vsel %vm1932_vm2, 0, %v539_v59 }
  0xaa   : > { %v609_v32 = vmax.bf16 %v1485_v33, %v605_v58 }
  0xac   : > { %v1951_v34 = vpop.permute.xlu0 %542  ;;  %v541_v36 = vpop.permute.xlu1 %540 }
  0xb0   : > { %v800_v11 = vpop.permute.xlu0 %799  ;;  %v1953_v63 = vpop.permute.xlu1 %544 }
  0xb1   : > { %v822_v6 = vmax.bf16 %v800_v11, %v1741_v46 }
  0xb4   : > { %v1955_v0 = vpop.permute.xlu0 %803  ;;  %v1957_v1 = vpop.permute.xlu1 %801 }
  0xb8   : > { %v1959_v3 = vpop.permute.xlu0 %807  ;;  %v1961_v4 = vpop.permute.xlu1 %805 }
  0xbc   : > { %v1963_v5 = vpop.permute.xlu0 %811  ;;  %v1965_v49 = vpop.permute.xlu1 %809 }
  0xc0   : > { %v768_v10 = vpop.permute.xlu0 %767  ;;  %v766_v13 = vpop.permute.xlu1 %765 }
  0xc1   : > { %v790_v14 = vsel %vm1932_vm2, 0, %v768_v10  ;;  %v789_v18 = vsel %vm1932_vm2, 0, %v766_v13 }
  0xc2   : > { %v1973_v19 = vmax.bf16 %v822_v6, %v790_v14  ;;  %v829_v21 = vmax.bf16 %v821_v12, %v789_v18 }
  0xc4   : > { %v772_v22 = vpop.permute.xlu0 %771  ;;  %v837_v23 = vmax.bf16 %v1973_v19, %v829_v21  ;;  %v770_v46 = vpop.permute.xlu1 %769 }
  0xc6   : > { %v841_v2 = vmax.bf16 %v1485_v33, %v837_v23 }
  0xc8   : > { %v1979_v27 = vpop.permute.xlu0 %775  ;;  %v862_v17 = vmul.bf16 %v1976_v20, %v841_v2  ;;  %v1983_v16 = vpop.permute.xlu1 %773 }
  0xca   : > { %v1985_v44 = vmax.bf16 %v862_v17, %v609_v32 }
  0xcc   : > { %v1989_v45 = vpop.permute.xlu0 %779  ;;  %v1991_v47 = vpop.permute.xlu1 %777 }
  0xd0   : > { %v574_v48 = vpop.permute.xlu0 %573  ;;  %v572_v40 = vpop.permute.xlu1 %571 }
  0xd1   : > { %v592_v9 = vmax.bf16 %v572_v40, %v1661_v38  ;;  %v593_v50 = vmax.bf16 %v574_v48, %v1664_v39  ;;  %v562_v38 = vsel %vm1932_vm2, 0, %v541_v36  ;;  %v564_v36 = vsel %vm1932_vm2, 0, %v1953_v63 }
  0xd2   : > { %v792_v63 = vsel %vm1932_vm2, 0, %v772_v22  ;;  %v824_v40 = vmax.bf16 %v1955_v0, %v1761_v61  ;;  %v794_v61 = vsel %vm1932_vm2, 0, %v1979_v27 }
  0xd3   : > { %v600_v53 = vmax.bf16 %v592_v9, %v560_v52  ;;  %v601_v6 = vmax.bf16 %v593_v50, %v561_v56  ;;  %v791_v9 = vsel %vm1932_vm2, 0, %v770_v46  ;;  %v823_v50 = vmax.bf16 %v1957_v1, %v1758_v60 }
  0xd4   : > { %v578_v55 = vpop.permute.xlu0 %577  ;;  %v576_v58 = vpop.permute.xlu1 %575  ;;  %v832_v52 = vmax.bf16 %v824_v40, %v792_v63  ;;  %v826_v46 = vmax.bf16 %v1959_v3, %v1774_v7  ;;  %v793_v1 = vsel %vm1932_vm2, 0, %v1983_v16  ;;  %v796_v3 = vsel %vm1932_vm2, 0, %v1989_v45 }
  0xd5   : > { %v606_v11 = vmax.bf16 %v600_v53, %v1948_v57  ;;  %v594_v10 = vmax.bf16 %v576_v58, %v1689_v51  ;;  %v595_v12 = vmax.bf16 %v578_v55, %v1693_v54  ;;  %v563_v57 = vsel %vm1932_vm2, 0, %v1951_v34 }
  0xd6   : > { %v831_v56 = vmax.bf16 %v823_v50, %v791_v9  ;;  %v834_v27 = vmax.bf16 %v826_v46, %v794_v61  ;;  %v795_v45 = vsel %vm1932_vm2, 0, %v1991_v47 }
  0xd7   : > { %v2008_v39 = vmax.bf16 %v606_v11, %v1946_v35  ;;  %v602_v62 = vmax.bf16 %v594_v10, %v562_v38  ;;  %v603_v14 = vmax.bf16 %v595_v12, %v563_v57  ;;  %v825_v12 = vmax.bf16 %v1961_v4, %v1799_v24 }
  0xd8   : > { %v1051_v13 = vpop.permute.xlu0 %1050  ;;  %v580_v59 = vpop.permute.xlu1 %579  ;;  %v838_v58 = vmax.bf16 %v832_v52, %v831_v56  ;;  %v827_v24 = vmax.bf16 %v1965_v49, %v1820_v42  ;;  %v828_v4 = vmax.bf16 %v1963_v5, %v1823_v43 }
  0xd9   : > { %v607_v51 = vmax.bf16 %v602_v62, %v601_v6  ;;  %v596_v54 = vmax.bf16 %v580_v59, %v1711_v8  ;;  %v1074_v0 = vmax.bf16 %v1051_v13, %v1858_v25  ;;  %v833_v13 = vmax.bf16 %v825_v12, %v793_v1 }
  0xda   : > { %v835_v47 = vmax.bf16 %v827_v24, %v795_v45 }
  0xdb   : > { %v2017_v18 = vmax.bf16 %v607_v51, %v600_v53  ;;  %v604_v35 = vmax.bf16 %v596_v54, %v564_v36  ;;  %v839_v54 = vmax.bf16 %v834_v27, %v833_v13  ;;  %v836_v36 = vmax.bf16 %v828_v4, %v796_v3 }
  0xdc   : > { %v1055_v21 = vpop.permute.xlu0 %1054  ;;  %v1053_v23 = vpop.permute.xlu1 %1052 }
  0xdd   : > { %v608_v2 = vmax.bf16 %v604_v35, %v603_v14  ;;  %v1075_v11 = vmax.bf16 %v1053_v23, %v1874_v15  ;;  %v1076_v16 = vmax.bf16 %v1055_v21, %v1866_v26  ;;  %v2060_v15 = vstv %s1112_s27  ;;  %s1388_s27 = scalar_lea.vmem %s2113_s22, 256 }
  0xde   : > { %v843_v40 = vmax.bf16 %v839_v54, %v832_v52  ;;  %v840_v9 = vmax.bf16 %v836_v36, %v835_v47  ;;  %p1389_p7 = scmp.ne.s32.totalorder %s2113_s22, %s1388_s27  ;;  %p1396_p12 = scmp.lt.s32.totalorder %s1394_s10, %s1388_s27 }
  0xdf   : > { %v2022_v34 = vmax.bf16 %v608_v2, %v602_v62  ;;  %v842_v62 = vmax.bf16 %v838_v58, %v1973_v19 }
  0xe0   : > { %v1059_v32 = vpop.permute.xlu0 %1058  ;;  %v1057_v17 = vpop.permute.xlu1 %1056  ;;  %p1390_p9 = pnand %p1389_p7, %p1570_p3  ;;  %p1397_p13 = por %p1396_p12, %p1395_p11 }
  0xe1   : > { %v1077_v59 = vmax.bf16 %v1057_v17, %v1888_v37  ;;  %v1078_v5 = vmax.bf16 %v1059_v32, %v1880_v28  ;;  %v863_v37 = vmul.bf16 %v1976_v20, %v842_v62 }
  0xe2   : > { %p1391_p10 = pneg %p1390_p9 }
  0xe4   : > { %v2024_v8 = vpop.permute.xlu0 %1062  ;;  %v2028_v48 = vpop.permute.xlu1 %1060  ;;  %p1398_p0 = pnand %p1397_p13, %p1391_p10 }
  0xe5   : > { %v1079_v21 = vmax.bf16 %v2028_v48, %v1904_v29  ;;  %v1080_v32 = vmax.bf16 %v2024_v8, %v1894_v41  ;;  %v864_v41 = vmul.bf16 %v1976_v20, %v843_v40  ;;  %v844_v8 = vmax.bf16 %v840_v9, %v834_v27 }
  0xe7   : > { %v865_v30 = vmul.bf16 %v1976_v20, %v844_v8 }
  0xe8   : > { %v1019_v53 = vpop.permute.xlu0 %1018  ;;  %v2036_v55 = vpop.permute.xlu1 %1064 }
  0xe9   : > { %v1042_v22 = vsel %vm1932_vm2, 0, %v1019_v53  ;;  %v1120_v53 = vmax.bf16 %v863_v37, %v2008_v39  ;;  %v1081_v52 = vmax.bf16 %v2036_v55, %v1916_v31  ;;  %v1121_v55 = vmax.bf16 %v864_v41, %v2017_v18 }
  0xea   : > { %v1082_v6 = vmax.bf16 %v1074_v0, %v1042_v22  ;;  %v1122_v12 = vmax.bf16 %v865_v30, %v2022_v34 }
  0xec   : > { %v1023_v60 = vpop.permute.xlu0 %1022  ;;  %v1021_v10 = vpop.permute.xlu1 %1020 }
  0xed   : > { %v1043_v25 = vsel %vm1932_vm2, 0, %v1021_v10  ;;  %v1044_v7 = vsel %vm1932_vm2, 0, %v1023_v60 }
  0xee   : > { %v1083_v38 = vmax.bf16 %v1075_v11, %v1043_v25  ;;  %v1084_v51 = vmax.bf16 %v1076_v16, %v1044_v7 }
  0xf0   : > { %v1027_v57 = vpop.permute.xlu0 %1026  ;;  %v1090_v26 = vmax.bf16 %v1083_v38, %v1082_v6  ;;  %v1025_v14 = vpop.permute.xlu1 %1024 }
  0xf1   : > { %v1045_v42 = vsel %vm1932_vm2, 0, %v1025_v14  ;;  %v1046_v43 = vsel %vm1932_vm2, 0, %v1027_v57 }
  0xf2   : > { %v1094_v49 = vmax.bf16 %v1485_v33, %v1090_v26  ;;  %v1085_v19 = vmax.bf16 %v1077_v59, %v1045_v42  ;;  %v1086_v17 = vmax.bf16 %v1078_v5, %v1046_v43 }
  0xf4   : > { %v1031_v35 = vpop.permute.xlu0 %1030  ;;  %v1115_v23 = vmul.bf16 %v2060_v15, %v1094_v49  ;;  %v1091_v2 = vmax.bf16 %v1085_v19, %v1084_v51  ;;  %v1029_v63 = vpop.permute.xlu1 %1028 }
  0xf5   : > { %v1047_v33 = vsel %vm1932_vm2, 0, %v1029_v63  ;;  %v1048_v28 = vsel %vm1932_vm2, 0, %v1031_v35 }
  0xf6   : > { %v1123_v29 = vmax.bf16 %v1985_v44, %v1115_v23  ;;  %v1095_v48 = vmax.bf16 %v1091_v2, %v1083_v38  ;;  %v1087_v50 = vmax.bf16 %v1079_v21, %v1047_v33  ;;  %v1088_v0 = vmax.bf16 %v1080_v32, %v1048_v28 }
  0xf8   : > { %v1127_v56 = vunpack.c.l.bf16 %v1123_v29  ;;  %v1116_v22 = vmul.bf16 %v2060_v15, %v1095_v48  ;;  %v1092_v61 = vmax.bf16 %v1087_v50, %v1086_v17  ;;  %v1033_v46 = vpop.permute.xlu1 %1032 }
  0xf9   : > { %v1049_v44 = vsel %vm1932_vm2, 0, %v1033_v46 }
  0xfa   : > { %1132 = vst.msk [vmem:[%s321_s26] sm:$0xf] %vm1131_vm3, %v1127_v56  ;;  %v1124_v39 = vmax.bf16 %v1120_v53, %v1116_v22  ;;  %v1096_v58 = vmax.bf16 %v1092_v61, %v1085_v19  ;;  %v1089_v31 = vmax.bf16 %v1081_v52, %v1049_v44 }
  0xfc   : > { %v1128_v60 = vunpack.c.l.bf16 %v1124_v39  ;;  %v1117_v1 = vmul.bf16 %v2060_v15, %v1096_v58  ;;  %v1093_v11 = vmax.bf16 %v1089_v31, %v1088_v0 }
  0xfe   : > { %1133 = vst.msk [vmem:[%s321_s26 + $0x4] sm:$0xf] %vm1131_vm3, %v1128_v60  ;;  %v1125_v6 = vmax.bf16 %v1121_v55, %v1117_v1  ;;  %v1097_v10 = vmax.bf16 %v1093_v11, %v1087_v50 }
 0x100   : > { %v1129_v27 = vunpack.c.l.bf16 %v1125_v6  ;;  %v1118_v25 = vmul.bf16 %v2060_v15, %v1097_v10 }
 0x102   : > { %1134 = vst.msk [vmem:[%s321_s26 + $0x8] sm:$0xf] %vm1131_vm3, %v1129_v27  ;;  %v1126_v18 = vmax.bf16 %v1122_v12, %v1118_v25 }
 0x104   : > { %v1130_v20 = vunpack.c.l.bf16 %v1126_v18 }
 0x106   : > { %1135 = vst.msk [vmem:[%s321_s26 + $0xc] sm:$0xf] %vm1131_vm3, %v1130_v20 }
 0x107   : > { %1401 = shalt.err (!%p1398_p0)
}
 0x108   : > { %s1402_s17 = scalar_lea.hbm %s2111_s15, 256  ;;  %s1406_s21 = scalar_lea.hbm %s2177_s5, 2048 }
 0x109   : > { %p1403_p1 = scmp.ne.s32.totalorder %s2111_s15, %s1402_s17  ;;  %p1407_p5 = scmp.lt.u32.totalorder %s2111_s15, %s2177_s5 }
 0x10a   : > { %p1408_p6 = scmp.lt.u32.totalorder %s1406_s21, %s1402_s17  ;;  %p1410_p9 = scmp.lt.u32.totalorder %s1402_s17, %s2111_s15 }
 0x10b   : > { %p1404_p2 = pnand %p1403_p1, %p1570_p3 }
 0x10c   : > { %p1409_p7 = por %p1408_p6, %p1407_p5 }
 0x10d   : > { %p1405_p4 = pneg %p1404_p2 }
 0x10e   : > { %p1411_p10 = por %p1410_p9, %p1409_p7 }
 0x110   : > { %p1412_p11 = pnand %p1411_p10, %p1405_p4 }
 0x112   : > { %1415 = shalt.err (!%p1412_p11)
}
 0x113   : > { %s1488_s27 = smov 4  }
 0x114   : > { %1313 = dma.vmem_to_hbm [thread:$0]  (%p1570_p3), %s2113_s22, 256, %s2111_s15, %s2118_s9, %s1486_s30, %s1486_s30, %s1488_s27  }
 0x115 PF: > { %p1319_p12 = scmp.ge.s32.totalorder %s1482_s25, 2  ;;  %s1167_s16 = sand.u32 1, %s1454_s18  }
 0x116   : > { %s1168_s8 = scalar_lea.sflag [#allocation3], %s1167_s16 }
 0x117   : > { %p1316_p13 = pnand %p1319_p12, %p1579_p8 }
 0x119   : > { %1449 = dma.done.wait (!%p1316_p13), %s1168_s8, 256  }
 0x11a   : > { %1451 = vsyncadd (!%p1316_p13), %s1168_s8, 4294967040  ;;  %s18_s25 = sadd.s32 1, %s1482_s25   ;;  %s2183_s18 = smov %s1458_s19 }
 0x11b   : > { %p15_p0 = scmp.ge.s32.totalorder %s18_s25, 10   ;;  %s2184_s19 = smov %s1462_s20 }
 0x11c   : > { %s2185_s20 = smov %s1588_s11  ;;  %s2186_s21 = smov %s1474_s23 }
 0x11d   : > { %s2187_s22 = smov %s1478_s24  ;;  %s2188_s23 = smov %s2191_s28 }
 0x11e   : > { %s2189_s24 = smov %s2195_s29  ;;  %17 = sbr.rel (!%p15_p0) target bundleno = 5 (0x5), region = 81 }
 0x125   :  { %1173 = vsyncpa [#allocation3], 1 }
 0x126   :  { %1175 = vsyncpa [#allocation3 + $0x1], 1 }

</bundles_post_ra>
